<compile_context>
chip_gen: v5e
topology: v5e:2x2
jax: 0.10.0
libtpu: 0.0.40
codegen_flags: <defaults>
</compile_context>

<pallas_src>
import functools
import numpy as np
import jax
import jax.numpy as jnp
from jax.experimental import pallas as pl
from jax.experimental.pallas import tpu as pltpu


# ---------------------------------------------------------------------------
# Deterministic parameter construction (mirrors RingAttractorLayer.__init__)
# ---------------------------------------------------------------------------
SCALE = 0.1          # connectivity_strength
LAMBDA_DECAY = 0.9
TAU0 = 10.0
BETA0 = 10.0


def _create_connectivity_matrix(input_size, output_size, scale):
    matrix = np.zeros((output_size, input_size))
    ratio = int(input_size / output_size)
    for i in range(output_size):
        for j in range(input_size):
            strength = min(abs(i - int(j / ratio)),
                           output_size - abs(i - int(j / ratio)))
            matrix[i, j] = scale * strength
    return matrix


def _create_connectivity_matrix_hidden(size, scale, lambda_decay):
    matrix = np.zeros((size, size))
    for i in range(size):
        for j in range(size):
            distance = min(abs(i - j), size - abs(i - j))
            strength = scale * np.exp(-distance / lambda_decay)
            matrix[i, j] = scale * strength
    return matrix


def _add_inhibitory_neuron(arr, inhib_strength=1.0):
    inhib_row = np.full((1, arr.shape[1]), inhib_strength)
    arr = np.vstack([inhib_row, arr])
    inhib_col = np.full((arr.shape[0], 1), inhib_strength)
    arr = np.hstack([inhib_col, arr])
    return arr


def make_ring_attractor_params(input_size, num_neurons):
    ih = _create_connectivity_matrix(input_size - (num_neurons - 1),
                                     num_neurons - 1, SCALE)
    hh = _create_connectivity_matrix_hidden(num_neurons - 1, SCALE, LAMBDA_DECAY)
    ih = _add_inhibitory_neuron(ih, 1.0)   # (num_neurons, input_size - num_neurons + 2)
    hh = _add_inhibitory_neuron(hh, 1.0)   # (num_neurons, num_neurons)
    # tau / beta are frozen-at-init scalars here; baked as compile-time constants.
    return (jnp.asarray(ih, jnp.float32),
            jnp.asarray(hh, jnp.float32),
            float(TAU0),
            float(BETA0))


def _round_up(v, m):
    return -(-v // m) * m


def _default_batch_block(B):
    # v7x has two TensorCores per chip: give the "parallel" grid axis >= 2 points
    # when the batch allows it.  Single-TC chips (v5e / v6e) want one big block
    # (each extra grid step is ~0.35 us of serial pipeline overhead).
    try:
        kind = jax.devices()[0].device_kind.lower()
        two_cores = "v7" in kind
    except Exception:  # pragma: no cover - device probing is best-effort
        two_cores = False
    if two_cores and B >= 16:
        return min(128, _round_up(-(-B // 2), 8))
    return min(B, 128)


# ---------------------------------------------------------------------------
# Pallas kernel: one invocation per batch block; full time recurrence in-kernel
# ---------------------------------------------------------------------------
def _ring_attractor_kernel(x_ref, wih_t_ref, whh_ref, o_ref, xp_ref,
                           *, seq_len, batch_block, beta):
    # x_ref    : (BB, T, D)   natural-layout input block
    # wih_t_ref: (D, H)       (W_ih / tau)^T  -- tau already folded in
    # whh_ref  : (H, H)       W_hh
    # o_ref    : (T, H, BB)   output block, batch on lanes
    # xp_ref   : (T, H, BB)   VMEM scratch: projected inputs, batch on lanes
    T, BB = seq_len, batch_block
    H = whh_ref.shape[0]
    D = x_ref.shape[-1]

    # (1) Bulk input projection for every timestep: ONE MXU matmul.  Row order is
    #     irrelevant to the matmul, so we use the natural batch-major flattening.
    x2 = x_ref[...].reshape(BB * T, D)                       # row = b*T + t
    proj = jnp.dot(x2, wih_t_ref[...],
                   preferred_element_type=jnp.float32)       # (BB*T, H)

    # (2) One-time staging into the recurrence-friendly layout (T, H, BB):
    #     time on the (cheaply indexed) leading axis, batch on lanes.  All of the
    #     slice/transpose work happens here, OFF the serial critical path.
    proj3 = proj.reshape(BB, T, H)
    for t in range(T):                                       # static, unrolled fill
        xp_ref[t] = proj3[:, t, :].T                         # (H, BB)

    # (3) Hoist the W_hh column broadcasts above the time loop (9 x (H, BB)).
    whh = whh_ref[...]
    whh_cols = [jnp.broadcast_to(whh[:, j:j + 1], (H, BB)) for j in range(H)]

    # (4) Serial recurrence entirely on VPU + EUP: 9 rank-1 broadcast-FMAs
    #     (balanced add tree) + tanh per step; no MXU latency on the h chain.
    def step(t, h):
        terms = [xp_ref[t]]                                  # (H, BB) input slab
        for j in range(H):
            terms.append(whh_cols[j] * h[j:j + 1, :])        # rank-1 update
        while len(terms) > 1:                                # balanced reduction
            nxt = [terms[k] + terms[k + 1] for k in range(0, len(terms) - 1, 2)]
            if len(terms) % 2:
                nxt.append(terms[-1])
            terms = nxt
        h_new = jnp.tanh(terms[0])                           # EUP
        o_ref[t] = h_new * beta                              # beta folded into store
        return h_new

    h0 = jnp.zeros((H, BB), jnp.float32)
    unroll = True if T <= 32 else 8
    jax.lax.fori_loop(0, T, step, h0, unroll=unroll)


def ring_attractor_forward(x, w_ih, w_hh, tau, beta, *, batch_block=None,
                           interpret=False):
    """x: (B, T, D) float32 -> (B, T, H) float32, H = num_neurons.

    tau / beta are compile-time Python scalars (frozen module hyperparameters).
    """
    B, T, D = x.shape
    H = w_ih.shape[0]
    assert w_ih.shape == (H, D) and w_hh.shape == (H, H)
    tau = float(tau)
    beta = float(beta)

    if batch_block is None:
        batch_block = _default_batch_block(B)
    BB = max(1, min(batch_block, B))
    nb = pl.cdiv(B, BB)
    Bp = nb * BB
    if Bp != B:
        x = jnp.pad(x, ((0, Bp - B), (0, 0), (0, 0)))

    # Fold 1/tau into the input weights (frozen buffer); transpose once for the MXU.
    wih_t = (jnp.asarray(w_ih, jnp.float32) / tau).T          # (D, H)
    whh = jnp.asarray(w_hh, jnp.float32)                      # (H, H)

    kernel = functools.partial(_ring_attractor_kernel,
                               seq_len=T, batch_block=BB, beta=beta)

    # Real (lane/sublane padded) VMEM footprint per batch block:
    #   x block   : 2 * BB * roundup(T,8) * roundup(D,128) * 4   (double-buffered)
    #   xp scratch: T * roundup(H,8) * roundup(BB,128) * 4
    #   out block : 2 * T * roundup(H,8) * roundup(BB,128) * 4   (double-buffered)
    Dp, Tp = _round_up(D, 128), _round_up(T, 8)
    Hp, BBp = _round_up(H, 8), _round_up(BB, 128)
    est_bytes = 4 * (2 * BB * Tp * Dp
                     + T * Hp * BBp
                     + 2 * T * Hp * BBp
                     + (Dp + Hp) * _round_up(H, 128))
    vmem_limit = int(min(64 * 2 ** 20, max(32 * 2 ** 20, 2 * est_bytes)))
    # TODO(synk): for long sequences (padded footprint approaching vmem_limit),
    # chunk T into VMEM-sized slabs with pltpu.emit_pipeline (weights via closure,
    # ~half-size chunks on v7x vs v6e) instead of keeping the full sequence resident.

    out = pl.pallas_call(
        kernel,
        out_shape=jax.ShapeDtypeStruct((nb, T, H, BB), jnp.float32),
        grid_spec=pltpu.PrefetchScalarGridSpec(
            num_scalar_prefetch=0,
            grid=(nb,),
            in_specs=[
                pl.BlockSpec((BB, T, D), lambda i: (i, 0, 0)),   # natural x block
                pl.BlockSpec((D, H), lambda i: (0, 0)),          # (W_ih/tau)^T
                pl.BlockSpec((H, H), lambda i: (0, 0)),          # W_hh
            ],
            out_specs=pl.BlockSpec((None, T, H, BB), lambda i: (i, 0, 0, 0)),
            scratch_shapes=[pltpu.VMEM((T, H, BB), jnp.float32)],
        ),
        compiler_params=pltpu.CompilerParams(
            dimension_semantics=("parallel",),   # batch blocks are independent
            vmem_limit_bytes=vmem_limit,
        ),
        interpret=interpret,
    )(x.astype(jnp.float32), wih_t, whh)

    # (nb, T, H, BB) -> (B, T, H).  Kernel-native layout is (T, H, BB); this single
    # transpose over the tiny H(=num_neurons)-wide output is the only wrapper-side
    # data movement (consumers that accept the native layout can skip it).
    out = out.transpose(0, 3, 1, 2).reshape(Bp, T, H)
    return out[:B]


# ---------------------------------------------------------------------------
# Pure-JAX reference for correctness checking
# ---------------------------------------------------------------------------
def ring_attractor_ref(x, w_ih, w_hh, tau, beta):
    B, _, _ = x.shape
    H = w_ih.shape[0]
    xs = x / tau

    def step(h, x_t):
        h_new = jnp.tanh(x_t @ w_ih.T + h @ w_hh.T)
        return h_new, h_new

    h0 = jnp.zeros((B, H), jnp.float32)
    _, hs = jax.lax.scan(step, h0, jnp.transpose(xs, (1, 0, 2)))
    return beta * jnp.transpose(hs, (1, 0, 2))


if __name__ == "__main__":
    INPUT_SIZE = 32      # RingAttractorLayer(input_size=...)
    NUM_NEURONS = 9      # ring of 8 action neurons + central inhibitory neuron
    B, T = 2, 8

    w_ih, w_hh, tau, beta = make_ring_attractor_params(INPUT_SIZE, NUM_NEURONS)
    D_eff = w_ih.shape[1]   # = INPUT_SIZE - NUM_NEURONS + 2  (see NOTE at top)

    key = jax.random.PRNGKey(0)
    x = jax.random.normal(key, (B, T, D_eff), dtype=jnp.float32)

    fwd = jax.jit(lambda xx: ring_attractor_forward(xx, w_ih, w_hh, tau, beta))
    out = jax.block_until_ready(fwd(x))

    ref = ring_attractor_ref(x, w_ih, w_hh, tau, beta)
    assert out.shape == (B, T, NUM_NEURONS)
    assert jnp.allclose(out, ref, atol=1e-5, rtol=1e-5), "mismatch vs reference"
    print("KERNEL_OK")
</pallas_src>

<mosaic_0001>
module attributes {stable_mosaic.version = 11 : i64} {
  func.func @_ring_attractor_kernel(%arg0: i32, %arg1: memref<2x8x25xf32, #tpu.memory_space<vmem>>, %arg2: memref<25x9xf32, #tpu.memory_space<vmem>>, %arg3: memref<9x9xf32, #tpu.memory_space<vmem>>, %arg4: memref<1x8x9x2xf32, #tpu.memory_space<vmem>>, %arg5: memref<8x9x2xf32, #tpu.memory_space<vmem>>) attributes {dimension_semantics = [#tpu.dimension_semantics<parallel>], iteration_bounds = array<i64: 1>, scalar_prefetch = 0 : i64, scratch_operands = 1 : i64, tpu.core_type = #tpu.core_type<tc>, window_params = [{transform_indices = @transform_0, window_bounds = array<i64: 2, 8, 25>}, {pipeline_mode = #tpu.pipeline_mode<synchronous>, transform_indices = @transform_1, window_bounds = array<i64: 25, 9>}, {pipeline_mode = #tpu.pipeline_mode<synchronous>, transform_indices = @transform_2, window_bounds = array<i64: 9, 9>}, {transform_indices = @transform_3, window_bounds = array<i64: 1, 8, 9, 2>}]} {
    %c0 = arith.constant 0 : index
    %c0_0 = arith.constant 0 : index
    %c0_1 = arith.constant 0 : index
    %0 = vector.load %arg1[%c0, %c0_0, %c0_1] : memref<2x8x25xf32, #tpu.memory_space<vmem>>, vector<2x8x25xf32>
    %1 = vector.shape_cast %0 : vector<2x8x25xf32> to vector<16x25xf32>
    %c0_2 = arith.constant 0 : index
    %c0_3 = arith.constant 0 : index
    %2 = vector.load %arg2[%c0_2, %c0_3] : memref<25x9xf32, #tpu.memory_space<vmem>>, vector<25x9xf32>
    %cst = arith.constant dense<0.000000e+00> : vector<16x9xf32>
    %3 = tpu.matmul %1, %2, %cst {dimension_numbers = #tpu.dot_dimension_numbers<[1], [0], [0], [1], [0, 0, 1, 1], [], []>} : vector<16x25xf32>, vector<25x9xf32>, vector<16x9xf32> -> vector<16x9xf32>
    %4 = vector.shape_cast %3 : vector<16x9xf32> to vector<2x8x9xf32>
    %5 = vector.extract_strided_slice %4 {offsets = [0, 0, 0], sizes = [2, 1, 9], strides = [1, 1, 1]} : vector<2x8x9xf32> to vector<2x1x9xf32>
    %6 = vector.shape_cast %5 : vector<2x1x9xf32> to vector<2x9xf32>
    %7 = tpu.transpose %6, [1, 0] : vector<2x9xf32> -> vector<9x2xf32>
    %c0_4 = arith.constant 0 : index
    %c0_5 = arith.constant 0 : index
    %c0_6 = arith.constant 0 : index
    %8 = vector.load %arg5[%c0_4, %c0_5, %c0_6] : memref<8x9x2xf32, #tpu.memory_space<vmem>>, vector<1x9x2xf32>
    %9 = vector.shape_cast %8 : vector<1x9x2xf32> to vector<9x2xf32>
    %10 = vector.shape_cast %7 : vector<9x2xf32> to vector<1x9x2xf32>
    tpu.vector_store %arg5[%c0_4, %c0_5, %c0_6], %10 {strides = array<i32>} : memref<8x9x2xf32, #tpu.memory_space<vmem>>, vector<1x9x2xf32>,
    %11 = vector.extract_strided_slice %4 {offsets = [0, 1, 0], sizes = [2, 1, 9], strides = [1, 1, 1]} : vector<2x8x9xf32> to vector<2x1x9xf32>
    %12 = vector.shape_cast %11 : vector<2x1x9xf32> to vector<2x9xf32>
    %13 = tpu.transpose %12, [1, 0] : vector<2x9xf32> -> vector<9x2xf32>
    %c1 = arith.constant 1 : index
    %c0_7 = arith.constant 0 : index
    %c0_8 = arith.constant 0 : index
    %14 = vector.load %arg5[%c1, %c0_7, %c0_8] : memref<8x9x2xf32, #tpu.memory_space<vmem>>, vector<1x9x2xf32>
    %15 = vector.shape_cast %14 : vector<1x9x2xf32> to vector<9x2xf32>
    %16 = vector.shape_cast %13 : vector<9x2xf32> to vector<1x9x2xf32>
    tpu.vector_store %arg5[%c1, %c0_7, %c0_8], %16 {strides = array<i32>} : memref<8x9x2xf32, #tpu.memory_space<vmem>>, vector<1x9x2xf32>,
    %17 = vector.extract_strided_slice %4 {offsets = [0, 2, 0], sizes = [2, 1, 9], strides = [1, 1, 1]} : vector<2x8x9xf32> to vector<2x1x9xf32>
    %18 = vector.shape_cast %17 : vector<2x1x9xf32> to vector<2x9xf32>
    %19 = tpu.transpose %18, [1, 0] : vector<2x9xf32> -> vector<9x2xf32>
    %c2 = arith.constant 2 : index
    %c0_9 = arith.constant 0 : index
    %c0_10 = arith.constant 0 : index
    %20 = vector.load %arg5[%c2, %c0_9, %c0_10] : memref<8x9x2xf32, #tpu.memory_space<vmem>>, vector<1x9x2xf32>
    %21 = vector.shape_cast %20 : vector<1x9x2xf32> to vector<9x2xf32>
    %22 = vector.shape_cast %19 : vector<9x2xf32> to vector<1x9x2xf32>
    tpu.vector_store %arg5[%c2, %c0_9, %c0_10], %22 {strides = array<i32>} : memref<8x9x2xf32, #tpu.memory_space<vmem>>, vector<1x9x2xf32>,
    %23 = vector.extract_strided_slice %4 {offsets = [0, 3, 0], sizes = [2, 1, 9], strides = [1, 1, 1]} : vector<2x8x9xf32> to vector<2x1x9xf32>
    %24 = vector.shape_cast %23 : vector<2x1x9xf32> to vector<2x9xf32>
    %25 = tpu.transpose %24, [1, 0] : vector<2x9xf32> -> vector<9x2xf32>
    %c3 = arith.constant 3 : index
    %c0_11 = arith.constant 0 : index
    %c0_12 = arith.constant 0 : index
    %26 = vector.load %arg5[%c3, %c0_11, %c0_12] : memref<8x9x2xf32, #tpu.memory_space<vmem>>, vector<1x9x2xf32>
    %27 = vector.shape_cast %26 : vector<1x9x2xf32> to vector<9x2xf32>
    %28 = vector.shape_cast %25 : vector<9x2xf32> to vector<1x9x2xf32>
    tpu.vector_store %arg5[%c3, %c0_11, %c0_12], %28 {strides = array<i32>} : memref<8x9x2xf32, #tpu.memory_space<vmem>>, vector<1x9x2xf32>,
    %29 = vector.extract_strided_slice %4 {offsets = [0, 4, 0], sizes = [2, 1, 9], strides = [1, 1, 1]} : vector<2x8x9xf32> to vector<2x1x9xf32>
    %30 = vector.shape_cast %29 : vector<2x1x9xf32> to vector<2x9xf32>
    %31 = tpu.transpose %30, [1, 0] : vector<2x9xf32> -> vector<9x2xf32>
    %c4 = arith.constant 4 : index
    %c0_13 = arith.constant 0 : index
    %c0_14 = arith.constant 0 : index
    %32 = vector.load %arg5[%c4, %c0_13, %c0_14] : memref<8x9x2xf32, #tpu.memory_space<vmem>>, vector<1x9x2xf32>
    %33 = vector.shape_cast %32 : vector<1x9x2xf32> to vector<9x2xf32>
    %34 = vector.shape_cast %31 : vector<9x2xf32> to vector<1x9x2xf32>
    tpu.vector_store %arg5[%c4, %c0_13, %c0_14], %34 {strides = array<i32>} : memref<8x9x2xf32, #tpu.memory_space<vmem>>, vector<1x9x2xf32>,
    %35 = vector.extract_strided_slice %4 {offsets = [0, 5, 0], sizes = [2, 1, 9], strides = [1, 1, 1]} : vector<2x8x9xf32> to vector<2x1x9xf32>
    %36 = vector.shape_cast %35 : vector<2x1x9xf32> to vector<2x9xf32>
    %37 = tpu.transpose %36, [1, 0] : vector<2x9xf32> -> vector<9x2xf32>
    %c5 = arith.constant 5 : index
    %c0_15 = arith.constant 0 : index
    %c0_16 = arith.constant 0 : index
    %38 = vector.load %arg5[%c5, %c0_15, %c0_16] : memref<8x9x2xf32, #tpu.memory_space<vmem>>, vector<1x9x2xf32>
    %39 = vector.shape_cast %38 : vector<1x9x2xf32> to vector<9x2xf32>
    %40 = vector.shape_cast %37 : vector<9x2xf32> to vector<1x9x2xf32>
    tpu.vector_store %arg5[%c5, %c0_15, %c0_16], %40 {strides = array<i32>} : memref<8x9x2xf32, #tpu.memory_space<vmem>>, vector<1x9x2xf32>,
    %41 = vector.extract_strided_slice %4 {offsets = [0, 6, 0], sizes = [2, 1, 9], strides = [1, 1, 1]} : vector<2x8x9xf32> to vector<2x1x9xf32>
    %42 = vector.shape_cast %41 : vector<2x1x9xf32> to vector<2x9xf32>
    %43 = tpu.transpose %42, [1, 0] : vector<2x9xf32> -> vector<9x2xf32>
    %c6 = arith.constant 6 : index
    %c0_17 = arith.constant 0 : index
    %c0_18 = arith.constant 0 : index
    %44 = vector.load %arg5[%c6, %c0_17, %c0_18] : memref<8x9x2xf32, #tpu.memory_space<vmem>>, vector<1x9x2xf32>
    %45 = vector.shape_cast %44 : vector<1x9x2xf32> to vector<9x2xf32>
    %46 = vector.shape_cast %43 : vector<9x2xf32> to vector<1x9x2xf32>
    tpu.vector_store %arg5[%c6, %c0_17, %c0_18], %46 {strides = array<i32>} : memref<8x9x2xf32, #tpu.memory_space<vmem>>, vector<1x9x2xf32>,
    %47 = vector.extract_strided_slice %4 {offsets = [0, 7, 0], sizes = [2, 1, 9], strides = [1, 1, 1]} : vector<2x8x9xf32> to vector<2x1x9xf32>
    %48 = vector.shape_cast %47 : vector<2x1x9xf32> to vector<2x9xf32>
    %49 = tpu.transpose %48, [1, 0] : vector<2x9xf32> -> vector<9x2xf32>
    %c7 = arith.constant 7 : index
    %c0_19 = arith.constant 0 : index
    %c0_20 = arith.constant 0 : index
    %50 = vector.load %arg5[%c7, %c0_19, %c0_20] : memref<8x9x2xf32, #tpu.memory_space<vmem>>, vector<1x9x2xf32>
    %51 = vector.shape_cast %50 : vector<1x9x2xf32> to vector<9x2xf32>
    %52 = vector.shape_cast %49 : vector<9x2xf32> to vector<1x9x2xf32>
    tpu.vector_store %arg5[%c7, %c0_19, %c0_20], %52 {strides = array<i32>} : memref<8x9x2xf32, #tpu.memory_space<vmem>>, vector<1x9x2xf32>,
    %c0_21 = arith.constant 0 : index
    %c0_22 = arith.constant 0 : index
    %53 = vector.load %arg3[%c0_21, %c0_22] : memref<9x9xf32, #tpu.memory_space<vmem>>, vector<9x9xf32>
    %54 = vector.extract_strided_slice %53 {offsets = [0, 0], sizes = [9, 1], strides = [1, 1]} : vector<9x9xf32> to vector<9x1xf32>
    %55 = vector.shape_cast %54 : vector<9x1xf32> to vector<9x1xf32>
    %56 = vector.broadcast %55 : vector<9x1xf32> to vector<9x2xf32>
    %57 = vector.extract_strided_slice %53 {offsets = [0, 1], sizes = [9, 1], strides = [1, 1]} : vector<9x9xf32> to vector<9x1xf32>
    %58 = vector.shape_cast %57 : vector<9x1xf32> to vector<9x1xf32>
    %59 = vector.broadcast %58 : vector<9x1xf32> to vector<9x2xf32>
    %60 = vector.extract_strided_slice %53 {offsets = [0, 2], sizes = [9, 1], strides = [1, 1]} : vector<9x9xf32> to vector<9x1xf32>
    %61 = vector.shape_cast %60 : vector<9x1xf32> to vector<9x1xf32>
    %62 = vector.broadcast %61 : vector<9x1xf32> to vector<9x2xf32>
    %63 = vector.extract_strided_slice %53 {offsets = [0, 3], sizes = [9, 1], strides = [1, 1]} : vector<9x9xf32> to vector<9x1xf32>
    %64 = vector.shape_cast %63 : vector<9x1xf32> to vector<9x1xf32>
    %65 = vector.broadcast %64 : vector<9x1xf32> to vector<9x2xf32>
    %66 = vector.extract_strided_slice %53 {offsets = [0, 4], sizes = [9, 1], strides = [1, 1]} : vector<9x9xf32> to vector<9x1xf32>
    %67 = vector.shape_cast %66 : vector<9x1xf32> to vector<9x1xf32>
    %68 = vector.broadcast %67 : vector<9x1xf32> to vector<9x2xf32>
    %69 = vector.extract_strided_slice %53 {offsets = [0, 5], sizes = [9, 1], strides = [1, 1]} : vector<9x9xf32> to vector<9x1xf32>
    %70 = vector.shape_cast %69 : vector<9x1xf32> to vector<9x1xf32>
    %71 = vector.broadcast %70 : vector<9x1xf32> to vector<9x2xf32>
    %72 = vector.extract_strided_slice %53 {offsets = [0, 6], sizes = [9, 1], strides = [1, 1]} : vector<9x9xf32> to vector<9x1xf32>
    %73 = vector.shape_cast %72 : vector<9x1xf32> to vector<9x1xf32>
    %74 = vector.broadcast %73 : vector<9x1xf32> to vector<9x2xf32>
    %75 = vector.extract_strided_slice %53 {offsets = [0, 7], sizes = [9, 1], strides = [1, 1]} : vector<9x9xf32> to vector<9x1xf32>
    %76 = vector.shape_cast %75 : vector<9x1xf32> to vector<9x1xf32>
    %77 = vector.broadcast %76 : vector<9x1xf32> to vector<9x2xf32>
    %78 = vector.extract_strided_slice %53 {offsets = [0, 8], sizes = [9, 1], strides = [1, 1]} : vector<9x9xf32> to vector<9x1xf32>
    %79 = vector.shape_cast %78 : vector<9x1xf32> to vector<9x1xf32>
    %80 = vector.broadcast %79 : vector<9x1xf32> to vector<9x2xf32>
    %cst_23 = arith.constant 0.000000e+00 : f32
    %81 = vector.broadcast %cst_23 : f32 to vector<9x2xf32>
    %c0_i32 = arith.constant 0 : i32
    %82 = arith.index_cast %c0_i32 : i32 to index
    %c0_24 = arith.constant 0 : index
    %c0_25 = arith.constant 0 : index
    %83 = vector.load %arg5[%82, %c0_24, %c0_25] : memref<8x9x2xf32, #tpu.memory_space<vmem>>, vector<1x9x2xf32>
    %84 = vector.shape_cast %83 : vector<1x9x2xf32> to vector<9x2xf32>
    %85 = vector.extract_strided_slice %81 {offsets = [0, 0], sizes = [1, 2], strides = [1, 1]} : vector<9x2xf32> to vector<1x2xf32>
    %86 = vector.broadcast %85 : vector<1x2xf32> to vector<9x2xf32>
    %87 = arith.mulf %56, %86 : vector<9x2xf32>
    %88 = vector.extract_strided_slice %81 {offsets = [1, 0], sizes = [1, 2], strides = [1, 1]} : vector<9x2xf32> to vector<1x2xf32>
    %89 = vector.broadcast %88 : vector<1x2xf32> to vector<9x2xf32>
    %90 = arith.mulf %59, %89 : vector<9x2xf32>
    %91 = vector.extract_strided_slice %81 {offsets = [2, 0], sizes = [1, 2], strides = [1, 1]} : vector<9x2xf32> to vector<1x2xf32>
    %92 = vector.broadcast %91 : vector<1x2xf32> to vector<9x2xf32>
    %93 = arith.mulf %62, %92 : vector<9x2xf32>
    %94 = vector.extract_strided_slice %81 {offsets = [3, 0], sizes = [1, 2], strides = [1, 1]} : vector<9x2xf32> to vector<1x2xf32>
    %95 = vector.broadcast %94 : vector<1x2xf32> to vector<9x2xf32>
    %96 = arith.mulf %65, %95 : vector<9x2xf32>
    %97 = vector.extract_strided_slice %81 {offsets = [4, 0], sizes = [1, 2], strides = [1, 1]} : vector<9x2xf32> to vector<1x2xf32>
    %98 = vector.broadcast %97 : vector<1x2xf32> to vector<9x2xf32>
    %99 = arith.mulf %68, %98 : vector<9x2xf32>
    %100 = vector.extract_strided_slice %81 {offsets = [5, 0], sizes = [1, 2], strides = [1, 1]} : vector<9x2xf32> to vector<1x2xf32>
    %101 = vector.broadcast %100 : vector<1x2xf32> to vector<9x2xf32>
    %102 = arith.mulf %71, %101 : vector<9x2xf32>
    %103 = vector.extract_strided_slice %81 {offsets = [6, 0], sizes = [1, 2], strides = [1, 1]} : vector<9x2xf32> to vector<1x2xf32>
    %104 = vector.broadcast %103 : vector<1x2xf32> to vector<9x2xf32>
    %105 = arith.mulf %74, %104 : vector<9x2xf32>
    %106 = vector.extract_strided_slice %81 {offsets = [7, 0], sizes = [1, 2], strides = [1, 1]} : vector<9x2xf32> to vector<1x2xf32>
    %107 = vector.broadcast %106 : vector<1x2xf32> to vector<9x2xf32>
    %108 = arith.mulf %77, %107 : vector<9x2xf32>
    %109 = vector.extract_strided_slice %81 {offsets = [8, 0], sizes = [1, 2], strides = [1, 1]} : vector<9x2xf32> to vector<1x2xf32>
    %110 = vector.broadcast %109 : vector<1x2xf32> to vector<9x2xf32>
    %111 = arith.mulf %80, %110 : vector<9x2xf32>
    %112 = arith.addf %84, %87 : vector<9x2xf32>
    %113 = arith.addf %90, %93 : vector<9x2xf32>
    %114 = arith.addf %96, %99 : vector<9x2xf32>
    %115 = arith.addf %102, %105 : vector<9x2xf32>
    %116 = arith.addf %108, %111 : vector<9x2xf32>
    %117 = arith.addf %112, %113 : vector<9x2xf32>
    %118 = arith.addf %114, %115 : vector<9x2xf32>
    %119 = arith.addf %117, %118 : vector<9x2xf32>
    %120 = arith.addf %119, %116 : vector<9x2xf32>
    %121 = math.tanh %120 : vector<9x2xf32>
    %cst_26 = arith.constant 1.000000e+01 : f32
    %122 = vector.broadcast %cst_26 : f32 to vector<9x2xf32>
    %123 = arith.mulf %121, %122 : vector<9x2xf32>
    %c0_27 = arith.constant 0 : index
    %124 = arith.index_cast %c0_i32 : i32 to index
    %c0_28 = arith.constant 0 : index
    %c0_29 = arith.constant 0 : index
    %125 = vector.load %arg4[%c0_27, %124, %c0_28, %c0_29] : memref<1x8x9x2xf32, #tpu.memory_space<vmem>>, vector<1x1x9x2xf32>
    %126 = vector.shape_cast %125 : vector<1x1x9x2xf32> to vector<9x2xf32>
    %127 = vector.shape_cast %123 : vector<9x2xf32> to vector<1x1x9x2xf32>
    tpu.vector_store %arg4[%c0_27, %124, %c0_28, %c0_29], %127 {strides = array<i32>} : memref<1x8x9x2xf32, #tpu.memory_space<vmem>>, vector<1x1x9x2xf32>,
    %c1_i32 = arith.constant 1 : i32
    %128 = arith.index_cast %c1_i32 : i32 to index
    %c0_30 = arith.constant 0 : index
    %c0_31 = arith.constant 0 : index
    %129 = vector.load %arg5[%128, %c0_30, %c0_31] : memref<8x9x2xf32, #tpu.memory_space<vmem>>, vector<1x9x2xf32>
    %130 = vector.shape_cast %129 : vector<1x9x2xf32> to vector<9x2xf32>
    %131 = vector.extract_strided_slice %121 {offsets = [0, 0], sizes = [1, 2], strides = [1, 1]} : vector<9x2xf32> to vector<1x2xf32>
    %132 = vector.broadcast %131 : vector<1x2xf32> to vector<9x2xf32>
    %133 = arith.mulf %56, %132 : vector<9x2xf32>
    %134 = vector.extract_strided_slice %121 {offsets = [1, 0], sizes = [1, 2], strides = [1, 1]} : vector<9x2xf32> to vector<1x2xf32>
    %135 = vector.broadcast %134 : vector<1x2xf32> to vector<9x2xf32>
    %136 = arith.mulf %59, %135 : vector<9x2xf32>
    %137 = vector.extract_strided_slice %121 {offsets = [2, 0], sizes = [1, 2], strides = [1, 1]} : vector<9x2xf32> to vector<1x2xf32>
    %138 = vector.broadcast %137 : vector<1x2xf32> to vector<9x2xf32>
    %139 = arith.mulf %62, %138 : vector<9x2xf32>
    %140 = vector.extract_strided_slice %121 {offsets = [3, 0], sizes = [1, 2], strides = [1, 1]} : vector<9x2xf32> to vector<1x2xf32>
    %141 = vector.broadcast %140 : vector<1x2xf32> to vector<9x2xf32>
    %142 = arith.mulf %65, %141 : vector<9x2xf32>
    %143 = vector.extract_strided_slice %121 {offsets = [4, 0], sizes = [1, 2], strides = [1, 1]} : vector<9x2xf32> to vector<1x2xf32>
    %144 = vector.broadcast %143 : vector<1x2xf32> to vector<9x2xf32>
    %145 = arith.mulf %68, %144 : vector<9x2xf32>
    %146 = vector.extract_strided_slice %121 {offsets = [5, 0], sizes = [1, 2], strides = [1, 1]} : vector<9x2xf32> to vector<1x2xf32>
    %147 = vector.broadcast %146 : vector<1x2xf32> to vector<9x2xf32>
    %148 = arith.mulf %71, %147 : vector<9x2xf32>
    %149 = vector.extract_strided_slice %121 {offsets = [6, 0], sizes = [1, 2], strides = [1, 1]} : vector<9x2xf32> to vector<1x2xf32>
    %150 = vector.broadcast %149 : vector<1x2xf32> to vector<9x2xf32>
    %151 = arith.mulf %74, %150 : vector<9x2xf32>
    %152 = vector.extract_strided_slice %121 {offsets = [7, 0], sizes = [1, 2], strides = [1, 1]} : vector<9x2xf32> to vector<1x2xf32>
    %153 = vector.broadcast %152 : vector<1x2xf32> to vector<9x2xf32>
    %154 = arith.mulf %77, %153 : vector<9x2xf32>
    %155 = vector.extract_strided_slice %121 {offsets = [8, 0], sizes = [1, 2], strides = [1, 1]} : vector<9x2xf32> to vector<1x2xf32>
    %156 = vector.broadcast %155 : vector<1x2xf32> to vector<9x2xf32>
    %157 = arith.mulf %80, %156 : vector<9x2xf32>
    %158 = arith.addf %130, %133 : vector<9x2xf32>
    %159 = arith.addf %136, %139 : vector<9x2xf32>
    %160 = arith.addf %142, %145 : vector<9x2xf32>
    %161 = arith.addf %148, %151 : vector<9x2xf32>
    %162 = arith.addf %154, %157 : vector<9x2xf32>
    %163 = arith.addf %158, %159 : vector<9x2xf32>
    %164 = arith.addf %160, %161 : vector<9x2xf32>
    %165 = arith.addf %163, %164 : vector<9x2xf32>
    %166 = arith.addf %165, %162 : vector<9x2xf32>
    %167 = math.tanh %166 : vector<9x2xf32>
    %cst_32 = arith.constant 1.000000e+01 : f32
    %168 = vector.broadcast %cst_32 : f32 to vector<9x2xf32>
    %169 = arith.mulf %167, %168 : vector<9x2xf32>
    %c0_33 = arith.constant 0 : index
    %170 = arith.index_cast %c1_i32 : i32 to index
    %c0_34 = arith.constant 0 : index
    %c0_35 = arith.constant 0 : index
    %171 = vector.load %arg4[%c0_33, %170, %c0_34, %c0_35] : memref<1x8x9x2xf32, #tpu.memory_space<vmem>>, vector<1x1x9x2xf32>
    %172 = vector.shape_cast %171 : vector<1x1x9x2xf32> to vector<9x2xf32>
    %173 = vector.shape_cast %169 : vector<9x2xf32> to vector<1x1x9x2xf32>
    tpu.vector_store %arg4[%c0_33, %170, %c0_34, %c0_35], %173 {strides = array<i32>} : memref<1x8x9x2xf32, #tpu.memory_space<vmem>>, vector<1x1x9x2xf32>,
    %c2_i32 = arith.constant 2 : i32
    %174 = arith.index_cast %c2_i32 : i32 to index
    %c0_36 = arith.constant 0 : index
    %c0_37 = arith.constant 0 : index
    %175 = vector.load %arg5[%174, %c0_36, %c0_37] : memref<8x9x2xf32, #tpu.memory_space<vmem>>, vector<1x9x2xf32>
    %176 = vector.shape_cast %175 : vector<1x9x2xf32> to vector<9x2xf32>
    %177 = vector.extract_strided_slice %167 {offsets = [0, 0], sizes = [1, 2], strides = [1, 1]} : vector<9x2xf32> to vector<1x2xf32>
    %178 = vector.broadcast %177 : vector<1x2xf32> to vector<9x2xf32>
    %179 = arith.mulf %56, %178 : vector<9x2xf32>
    %180 = vector.extract_strided_slice %167 {offsets = [1, 0], sizes = [1, 2], strides = [1, 1]} : vector<9x2xf32> to vector<1x2xf32>
    %181 = vector.broadcast %180 : vector<1x2xf32> to vector<9x2xf32>
    %182 = arith.mulf %59, %181 : vector<9x2xf32>
    %183 = vector.extract_strided_slice %167 {offsets = [2, 0], sizes = [1, 2], strides = [1, 1]} : vector<9x2xf32> to vector<1x2xf32>
    %184 = vector.broadcast %183 : vector<1x2xf32> to vector<9x2xf32>
    %185 = arith.mulf %62, %184 : vector<9x2xf32>
    %186 = vector.extract_strided_slice %167 {offsets = [3, 0], sizes = [1, 2], strides = [1, 1]} : vector<9x2xf32> to vector<1x2xf32>
    %187 = vector.broadcast %186 : vector<1x2xf32> to vector<9x2xf32>
    %188 = arith.mulf %65, %187 : vector<9x2xf32>
    %189 = vector.extract_strided_slice %167 {offsets = [4, 0], sizes = [1, 2], strides = [1, 1]} : vector<9x2xf32> to vector<1x2xf32>
    %190 = vector.broadcast %189 : vector<1x2xf32> to vector<9x2xf32>
    %191 = arith.mulf %68, %190 : vector<9x2xf32>
    %192 = vector.extract_strided_slice %167 {offsets = [5, 0], sizes = [1, 2], strides = [1, 1]} : vector<9x2xf32> to vector<1x2xf32>
    %193 = vector.broadcast %192 : vector<1x2xf32> to vector<9x2xf32>
    %194 = arith.mulf %71, %193 : vector<9x2xf32>
    %195 = vector.extract_strided_slice %167 {offsets = [6, 0], sizes = [1, 2], strides = [1, 1]} : vector<9x2xf32> to vector<1x2xf32>
    %196 = vector.broadcast %195 : vector<1x2xf32> to vector<9x2xf32>
    %197 = arith.mulf %74, %196 : vector<9x2xf32>
    %198 = vector.extract_strided_slice %167 {offsets = [7, 0], sizes = [1, 2], strides = [1, 1]} : vector<9x2xf32> to vector<1x2xf32>
    %199 = vector.broadcast %198 : vector<1x2xf32> to vector<9x2xf32>
    %200 = arith.mulf %77, %199 : vector<9x2xf32>
    %201 = vector.extract_strided_slice %167 {offsets = [8, 0], sizes = [1, 2], strides = [1, 1]} : vector<9x2xf32> to vector<1x2xf32>
    %202 = vector.broadcast %201 : vector<1x2xf32> to vector<9x2xf32>
    %203 = arith.mulf %80, %202 : vector<9x2xf32>
    %204 = arith.addf %176, %179 : vector<9x2xf32>
    %205 = arith.addf %182, %185 : vector<9x2xf32>
    %206 = arith.addf %188, %191 : vector<9x2xf32>
    %207 = arith.addf %194, %197 : vector<9x2xf32>
    %208 = arith.addf %200, %203 : vector<9x2xf32>
    %209 = arith.addf %204, %205 : vector<9x2xf32>
    %210 = arith.addf %206, %207 : vector<9x2xf32>
    %211 = arith.addf %209, %210 : vector<9x2xf32>
    %212 = arith.addf %211, %208 : vector<9x2xf32>
    %213 = math.tanh %212 : vector<9x2xf32>
    %cst_38 = arith.constant 1.000000e+01 : f32
    %214 = vector.broadcast %cst_38 : f32 to vector<9x2xf32>
    %215 = arith.mulf %213, %214 : vector<9x2xf32>
    %c0_39 = arith.constant 0 : index
    %216 = arith.index_cast %c2_i32 : i32 to index
    %c0_40 = arith.constant 0 : index
    %c0_41 = arith.constant 0 : index
    %217 = vector.load %arg4[%c0_39, %216, %c0_40, %c0_41] : memref<1x8x9x2xf32, #tpu.memory_space<vmem>>, vector<1x1x9x2xf32>
    %218 = vector.shape_cast %217 : vector<1x1x9x2xf32> to vector<9x2xf32>
    %219 = vector.shape_cast %215 : vector<9x2xf32> to vector<1x1x9x2xf32>
    tpu.vector_store %arg4[%c0_39, %216, %c0_40, %c0_41], %219 {strides = array<i32>} : memref<1x8x9x2xf32, #tpu.memory_space<vmem>>, vector<1x1x9x2xf32>,
    %c3_i32 = arith.constant 3 : i32
    %220 = arith.index_cast %c3_i32 : i32 to index
    %c0_42 = arith.constant 0 : index
    %c0_43 = arith.constant 0 : index
    %221 = vector.load %arg5[%220, %c0_42, %c0_43] : memref<8x9x2xf32, #tpu.memory_space<vmem>>, vector<1x9x2xf32>
    %222 = vector.shape_cast %221 : vector<1x9x2xf32> to vector<9x2xf32>
    %223 = vector.extract_strided_slice %213 {offsets = [0, 0], sizes = [1, 2], strides = [1, 1]} : vector<9x2xf32> to vector<1x2xf32>
    %224 = vector.broadcast %223 : vector<1x2xf32> to vector<9x2xf32>
    %225 = arith.mulf %56, %224 : vector<9x2xf32>
    %226 = vector.extract_strided_slice %213 {offsets = [1, 0], sizes = [1, 2], strides = [1, 1]} : vector<9x2xf32> to vector<1x2xf32>
    %227 = vector.broadcast %226 : vector<1x2xf32> to vector<9x2xf32>
    %228 = arith.mulf %59, %227 : vector<9x2xf32>
    %229 = vector.extract_strided_slice %213 {offsets = [2, 0], sizes = [1, 2], strides = [1, 1]} : vector<9x2xf32> to vector<1x2xf32>
    %230 = vector.broadcast %229 : vector<1x2xf32> to vector<9x2xf32>
    %231 = arith.mulf %62, %230 : vector<9x2xf32>
    %232 = vector.extract_strided_slice %213 {offsets = [3, 0], sizes = [1, 2], strides = [1, 1]} : vector<9x2xf32> to vector<1x2xf32>
    %233 = vector.broadcast %232 : vector<1x2xf32> to vector<9x2xf32>
    %234 = arith.mulf %65, %233 : vector<9x2xf32>
    %235 = vector.extract_strided_slice %213 {offsets = [4, 0], sizes = [1, 2], strides = [1, 1]} : vector<9x2xf32> to vector<1x2xf32>
    %236 = vector.broadcast %235 : vector<1x2xf32> to vector<9x2xf32>
    %237 = arith.mulf %68, %236 : vector<9x2xf32>
    %238 = vector.extract_strided_slice %213 {offsets = [5, 0], sizes = [1, 2], strides = [1, 1]} : vector<9x2xf32> to vector<1x2xf32>
    %239 = vector.broadcast %238 : vector<1x2xf32> to vector<9x2xf32>
    %240 = arith.mulf %71, %239 : vector<9x2xf32>
    %241 = vector.extract_strided_slice %213 {offsets = [6, 0], sizes = [1, 2], strides = [1, 1]} : vector<9x2xf32> to vector<1x2xf32>
    %242 = vector.broadcast %241 : vector<1x2xf32> to vector<9x2xf32>
    %243 = arith.mulf %74, %242 : vector<9x2xf32>
    %244 = vector.extract_strided_slice %213 {offsets = [7, 0], sizes = [1, 2], strides = [1, 1]} : vector<9x2xf32> to vector<1x2xf32>
    %245 = vector.broadcast %244 : vector<1x2xf32> to vector<9x2xf32>
    %246 = arith.mulf %77, %245 : vector<9x2xf32>
    %247 = vector.extract_strided_slice %213 {offsets = [8, 0], sizes = [1, 2], strides = [1, 1]} : vector<9x2xf32> to vector<1x2xf32>
    %248 = vector.broadcast %247 : vector<1x2xf32> to vector<9x2xf32>
    %249 = arith.mulf %80, %248 : vector<9x2xf32>
    %250 = arith.addf %222, %225 : vector<9x2xf32>
    %251 = arith.addf %228, %231 : vector<9x2xf32>
    %252 = arith.addf %234, %237 : vector<9x2xf32>
    %253 = arith.addf %240, %243 : vector<9x2xf32>
    %254 = arith.addf %246, %249 : vector<9x2xf32>
    %255 = arith.addf %250, %251 : vector<9x2xf32>
    %256 = arith.addf %252, %253 : vector<9x2xf32>
    %257 = arith.addf %255, %256 : vector<9x2xf32>
    %258 = arith.addf %257, %254 : vector<9x2xf32>
    %259 = math.tanh %258 : vector<9x2xf32>
    %cst_44 = arith.constant 1.000000e+01 : f32
    %260 = vector.broadcast %cst_44 : f32 to vector<9x2xf32>
    %261 = arith.mulf %259, %260 : vector<9x2xf32>
    %c0_45 = arith.constant 0 : index
    %262 = arith.index_cast %c3_i32 : i32 to index
    %c0_46 = arith.constant 0 : index
    %c0_47 = arith.constant 0 : index
    %263 = vector.load %arg4[%c0_45, %262, %c0_46, %c0_47] : memref<1x8x9x2xf32, #tpu.memory_space<vmem>>, vector<1x1x9x2xf32>
    %264 = vector.shape_cast %263 : vector<1x1x9x2xf32> to vector<9x2xf32>
    %265 = vector.shape_cast %261 : vector<9x2xf32> to vector<1x1x9x2xf32>
    tpu.vector_store %arg4[%c0_45, %262, %c0_46, %c0_47], %265 {strides = array<i32>} : memref<1x8x9x2xf32, #tpu.memory_space<vmem>>, vector<1x1x9x2xf32>,
    %c4_i32 = arith.constant 4 : i32
    %266 = arith.index_cast %c4_i32 : i32 to index
    %c0_48 = arith.constant 0 : index
    %c0_49 = arith.constant 0 : index
    %267 = vector.load %arg5[%266, %c0_48, %c0_49] : memref<8x9x2xf32, #tpu.memory_space<vmem>>, vector<1x9x2xf32>
    %268 = vector.shape_cast %267 : vector<1x9x2xf32> to vector<9x2xf32>
    %269 = vector.extract_strided_slice %259 {offsets = [0, 0], sizes = [1, 2], strides = [1, 1]} : vector<9x2xf32> to vector<1x2xf32>
    %270 = vector.broadcast %269 : vector<1x2xf32> to vector<9x2xf32>
    %271 = arith.mulf %56, %270 : vector<9x2xf32>
    %272 = vector.extract_strided_slice %259 {offsets = [1, 0], sizes = [1, 2], strides = [1, 1]} : vector<9x2xf32> to vector<1x2xf32>
    %273 = vector.broadcast %272 : vector<1x2xf32> to vector<9x2xf32>
    %274 = arith.mulf %59, %273 : vector<9x2xf32>
    %275 = vector.extract_strided_slice %259 {offsets = [2, 0], sizes = [1, 2], strides = [1, 1]} : vector<9x2xf32> to vector<1x2xf32>
    %276 = vector.broadcast %275 : vector<1x2xf32> to vector<9x2xf32>
    %277 = arith.mulf %62, %276 : vector<9x2xf32>
    %278 = vector.extract_strided_slice %259 {offsets = [3, 0], sizes = [1, 2], strides = [1, 1]} : vector<9x2xf32> to vector<1x2xf32>
    %279 = vector.broadcast %278 : vector<1x2xf32> to vector<9x2xf32>
    %280 = arith.mulf %65, %279 : vector<9x2xf32>
    %281 = vector.extract_strided_slice %259 {offsets = [4, 0], sizes = [1, 2], strides = [1, 1]} : vector<9x2xf32> to vector<1x2xf32>
    %282 = vector.broadcast %281 : vector<1x2xf32> to vector<9x2xf32>
    %283 = arith.mulf %68, %282 : vector<9x2xf32>
    %284 = vector.extract_strided_slice %259 {offsets = [5, 0], sizes = [1, 2], strides = [1, 1]} : vector<9x2xf32> to vector<1x2xf32>
    %285 = vector.broadcast %284 : vector<1x2xf32> to vector<9x2xf32>
    %286 = arith.mulf %71, %285 : vector<9x2xf32>
    %287 = vector.extract_strided_slice %259 {offsets = [6, 0], sizes = [1, 2], strides = [1, 1]} : vector<9x2xf32> to vector<1x2xf32>
    %288 = vector.broadcast %287 : vector<1x2xf32> to vector<9x2xf32>
    %289 = arith.mulf %74, %288 : vector<9x2xf32>
    %290 = vector.extract_strided_slice %259 {offsets = [7, 0], sizes = [1, 2], strides = [1, 1]} : vector<9x2xf32> to vector<1x2xf32>
    %291 = vector.broadcast %290 : vector<1x2xf32> to vector<9x2xf32>
    %292 = arith.mulf %77, %291 : vector<9x2xf32>
    %293 = vector.extract_strided_slice %259 {offsets = [8, 0], sizes = [1, 2], strides = [1, 1]} : vector<9x2xf32> to vector<1x2xf32>
    %294 = vector.broadcast %293 : vector<1x2xf32> to vector<9x2xf32>
    %295 = arith.mulf %80, %294 : vector<9x2xf32>
    %296 = arith.addf %268, %271 : vector<9x2xf32>
    %297 = arith.addf %274, %277 : vector<9x2xf32>
    %298 = arith.addf %280, %283 : vector<9x2xf32>
    %299 = arith.addf %286, %289 : vector<9x2xf32>
    %300 = arith.addf %292, %295 : vector<9x2xf32>
    %301 = arith.addf %296, %297 : vector<9x2xf32>
    %302 = arith.addf %298, %299 : vector<9x2xf32>
    %303 = arith.addf %301, %302 : vector<9x2xf32>
    %304 = arith.addf %303, %300 : vector<9x2xf32>
    %305 = math.tanh %304 : vector<9x2xf32>
    %cst_50 = arith.constant 1.000000e+01 : f32
    %306 = vector.broadcast %cst_50 : f32 to vector<9x2xf32>
    %307 = arith.mulf %305, %306 : vector<9x2xf32>
    %c0_51 = arith.constant 0 : index
    %308 = arith.index_cast %c4_i32 : i32 to index
    %c0_52 = arith.constant 0 : index
    %c0_53 = arith.constant 0 : index
    %309 = vector.load %arg4[%c0_51, %308, %c0_52, %c0_53] : memref<1x8x9x2xf32, #tpu.memory_space<vmem>>, vector<1x1x9x2xf32>
    %310 = vector.shape_cast %309 : vector<1x1x9x2xf32> to vector<9x2xf32>
    %311 = vector.shape_cast %307 : vector<9x2xf32> to vector<1x1x9x2xf32>
    tpu.vector_store %arg4[%c0_51, %308, %c0_52, %c0_53], %311 {strides = array<i32>} : memref<1x8x9x2xf32, #tpu.memory_space<vmem>>, vector<1x1x9x2xf32>,
    %c5_i32 = arith.constant 5 : i32
    %312 = arith.index_cast %c5_i32 : i32 to index
    %c0_54 = arith.constant 0 : index
    %c0_55 = arith.constant 0 : index
    %313 = vector.load %arg5[%312, %c0_54, %c0_55] : memref<8x9x2xf32, #tpu.memory_space<vmem>>, vector<1x9x2xf32>
    %314 = vector.shape_cast %313 : vector<1x9x2xf32> to vector<9x2xf32>
    %315 = vector.extract_strided_slice %305 {offsets = [0, 0], sizes = [1, 2], strides = [1, 1]} : vector<9x2xf32> to vector<1x2xf32>
    %316 = vector.broadcast %315 : vector<1x2xf32> to vector<9x2xf32>
    %317 = arith.mulf %56, %316 : vector<9x2xf32>
    %318 = vector.extract_strided_slice %305 {offsets = [1, 0], sizes = [1, 2], strides = [1, 1]} : vector<9x2xf32> to vector<1x2xf32>
    %319 = vector.broadcast %318 : vector<1x2xf32> to vector<9x2xf32>
    %320 = arith.mulf %59, %319 : vector<9x2xf32>
    %321 = vector.extract_strided_slice %305 {offsets = [2, 0], sizes = [1, 2], strides = [1, 1]} : vector<9x2xf32> to vector<1x2xf32>
    %322 = vector.broadcast %321 : vector<1x2xf32> to vector<9x2xf32>
    %323 = arith.mulf %62, %322 : vector<9x2xf32>
    %324 = vector.extract_strided_slice %305 {offsets = [3, 0], sizes = [1, 2], strides = [1, 1]} : vector<9x2xf32> to vector<1x2xf32>
    %325 = vector.broadcast %324 : vector<1x2xf32> to vector<9x2xf32>
    %326 = arith.mulf %65, %325 : vector<9x2xf32>
    %327 = vector.extract_strided_slice %305 {offsets = [4, 0], sizes = [1, 2], strides = [1, 1]} : vector<9x2xf32> to vector<1x2xf32>
    %328 = vector.broadcast %327 : vector<1x2xf32> to vector<9x2xf32>
    %329 = arith.mulf %68, %328 : vector<9x2xf32>
    %330 = vector.extract_strided_slice %305 {offsets = [5, 0], sizes = [1, 2], strides = [1, 1]} : vector<9x2xf32> to vector<1x2xf32>
    %331 = vector.broadcast %330 : vector<1x2xf32> to vector<9x2xf32>
    %332 = arith.mulf %71, %331 : vector<9x2xf32>
    %333 = vector.extract_strided_slice %305 {offsets = [6, 0], sizes = [1, 2], strides = [1, 1]} : vector<9x2xf32> to vector<1x2xf32>
    %334 = vector.broadcast %333 : vector<1x2xf32> to vector<9x2xf32>
    %335 = arith.mulf %74, %334 : vector<9x2xf32>
    %336 = vector.extract_strided_slice %305 {offsets = [7, 0], sizes = [1, 2], strides = [1, 1]} : vector<9x2xf32> to vector<1x2xf32>
    %337 = vector.broadcast %336 : vector<1x2xf32> to vector<9x2xf32>
    %338 = arith.mulf %77, %337 : vector<9x2xf32>
    %339 = vector.extract_strided_slice %305 {offsets = [8, 0], sizes = [1, 2], strides = [1, 1]} : vector<9x2xf32> to vector<1x2xf32>
    %340 = vector.broadcast %339 : vector<1x2xf32> to vector<9x2xf32>
    %341 = arith.mulf %80, %340 : vector<9x2xf32>
    %342 = arith.addf %314, %317 : vector<9x2xf32>
    %343 = arith.addf %320, %323 : vector<9x2xf32>
    %344 = arith.addf %326, %329 : vector<9x2xf32>
    %345 = arith.addf %332, %335 : vector<9x2xf32>
    %346 = arith.addf %338, %341 : vector<9x2xf32>
    %347 = arith.addf %342, %343 : vector<9x2xf32>
    %348 = arith.addf %344, %345 : vector<9x2xf32>
    %349 = arith.addf %347, %348 : vector<9x2xf32>
    %350 = arith.addf %349, %346 : vector<9x2xf32>
    %351 = math.tanh %350 : vector<9x2xf32>
    %cst_56 = arith.constant 1.000000e+01 : f32
    %352 = vector.broadcast %cst_56 : f32 to vector<9x2xf32>
    %353 = arith.mulf %351, %352 : vector<9x2xf32>
    %c0_57 = arith.constant 0 : index
    %354 = arith.index_cast %c5_i32 : i32 to index
    %c0_58 = arith.constant 0 : index
    %c0_59 = arith.constant 0 : index
    %355 = vector.load %arg4[%c0_57, %354, %c0_58, %c0_59] : memref<1x8x9x2xf32, #tpu.memory_space<vmem>>, vector<1x1x9x2xf32>
    %356 = vector.shape_cast %355 : vector<1x1x9x2xf32> to vector<9x2xf32>
    %357 = vector.shape_cast %353 : vector<9x2xf32> to vector<1x1x9x2xf32>
    tpu.vector_store %arg4[%c0_57, %354, %c0_58, %c0_59], %357 {strides = array<i32>} : memref<1x8x9x2xf32, #tpu.memory_space<vmem>>, vector<1x1x9x2xf32>,
    %c6_i32 = arith.constant 6 : i32
    %358 = arith.index_cast %c6_i32 : i32 to index
    %c0_60 = arith.constant 0 : index
    %c0_61 = arith.constant 0 : index
    %359 = vector.load %arg5[%358, %c0_60, %c0_61] : memref<8x9x2xf32, #tpu.memory_space<vmem>>, vector<1x9x2xf32>
    %360 = vector.shape_cast %359 : vector<1x9x2xf32> to vector<9x2xf32>
    %361 = vector.extract_strided_slice %351 {offsets = [0, 0], sizes = [1, 2], strides = [1, 1]} : vector<9x2xf32> to vector<1x2xf32>
    %362 = vector.broadcast %361 : vector<1x2xf32> to vector<9x2xf32>
    %363 = arith.mulf %56, %362 : vector<9x2xf32>
    %364 = vector.extract_strided_slice %351 {offsets = [1, 0], sizes = [1, 2], strides = [1, 1]} : vector<9x2xf32> to vector<1x2xf32>
    %365 = vector.broadcast %364 : vector<1x2xf32> to vector<9x2xf32>
    %366 = arith.mulf %59, %365 : vector<9x2xf32>
    %367 = vector.extract_strided_slice %351 {offsets = [2, 0], sizes = [1, 2], strides = [1, 1]} : vector<9x2xf32> to vector<1x2xf32>
    %368 = vector.broadcast %367 : vector<1x2xf32> to vector<9x2xf32>
    %369 = arith.mulf %62, %368 : vector<9x2xf32>
    %370 = vector.extract_strided_slice %351 {offsets = [3, 0], sizes = [1, 2], strides = [1, 1]} : vector<9x2xf32> to vector<1x2xf32>
    %371 = vector.broadcast %370 : vector<1x2xf32> to vector<9x2xf32>
    %372 = arith.mulf %65, %371 : vector<9x2xf32>
    %373 = vector.extract_strided_slice %351 {offsets = [4, 0], sizes = [1, 2], strides = [1, 1]} : vector<9x2xf32> to vector<1x2xf32>
    %374 = vector.broadcast %373 : vector<1x2xf32> to vector<9x2xf32>
    %375 = arith.mulf %68, %374 : vector<9x2xf32>
    %376 = vector.extract_strided_slice %351 {offsets = [5, 0], sizes = [1, 2], strides = [1, 1]} : vector<9x2xf32> to vector<1x2xf32>
    %377 = vector.broadcast %376 : vector<1x2xf32> to vector<9x2xf32>
    %378 = arith.mulf %71, %377 : vector<9x2xf32>
    %379 = vector.extract_strided_slice %351 {offsets = [6, 0], sizes = [1, 2], strides = [1, 1]} : vector<9x2xf32> to vector<1x2xf32>
    %380 = vector.broadcast %379 : vector<1x2xf32> to vector<9x2xf32>
    %381 = arith.mulf %74, %380 : vector<9x2xf32>
    %382 = vector.extract_strided_slice %351 {offsets = [7, 0], sizes = [1, 2], strides = [1, 1]} : vector<9x2xf32> to vector<1x2xf32>
    %383 = vector.broadcast %382 : vector<1x2xf32> to vector<9x2xf32>
    %384 = arith.mulf %77, %383 : vector<9x2xf32>
    %385 = vector.extract_strided_slice %351 {offsets = [8, 0], sizes = [1, 2], strides = [1, 1]} : vector<9x2xf32> to vector<1x2xf32>
    %386 = vector.broadcast %385 : vector<1x2xf32> to vector<9x2xf32>
    %387 = arith.mulf %80, %386 : vector<9x2xf32>
    %388 = arith.addf %360, %363 : vector<9x2xf32>
    %389 = arith.addf %366, %369 : vector<9x2xf32>
    %390 = arith.addf %372, %375 : vector<9x2xf32>
    %391 = arith.addf %378, %381 : vector<9x2xf32>
    %392 = arith.addf %384, %387 : vector<9x2xf32>
    %393 = arith.addf %388, %389 : vector<9x2xf32>
    %394 = arith.addf %390, %391 : vector<9x2xf32>
    %395 = arith.addf %393, %394 : vector<9x2xf32>
    %396 = arith.addf %395, %392 : vector<9x2xf32>
    %397 = math.tanh %396 : vector<9x2xf32>
    %cst_62 = arith.constant 1.000000e+01 : f32
    %398 = vector.broadcast %cst_62 : f32 to vector<9x2xf32>
    %399 = arith.mulf %397, %398 : vector<9x2xf32>
    %c0_63 = arith.constant 0 : index
    %400 = arith.index_cast %c6_i32 : i32 to index
    %c0_64 = arith.constant 0 : index
    %c0_65 = arith.constant 0 : index
    %401 = vector.load %arg4[%c0_63, %400, %c0_64, %c0_65] : memref<1x8x9x2xf32, #tpu.memory_space<vmem>>, vector<1x1x9x2xf32>
    %402 = vector.shape_cast %401 : vector<1x1x9x2xf32> to vector<9x2xf32>
    %403 = vector.shape_cast %399 : vector<9x2xf32> to vector<1x1x9x2xf32>
    tpu.vector_store %arg4[%c0_63, %400, %c0_64, %c0_65], %403 {strides = array<i32>} : memref<1x8x9x2xf32, #tpu.memory_space<vmem>>, vector<1x1x9x2xf32>,
    %c7_i32 = arith.constant 7 : i32
    %404 = arith.index_cast %c7_i32 : i32 to index
    %c0_66 = arith.constant 0 : index
    %c0_67 = arith.constant 0 : index
    %405 = vector.load %arg5[%404, %c0_66, %c0_67] : memref<8x9x2xf32, #tpu.memory_space<vmem>>, vector<1x9x2xf32>
    %406 = vector.shape_cast %405 : vector<1x9x2xf32> to vector<9x2xf32>
    %407 = vector.extract_strided_slice %397 {offsets = [0, 0], sizes = [1, 2], strides = [1, 1]} : vector<9x2xf32> to vector<1x2xf32>
    %408 = vector.broadcast %407 : vector<1x2xf32> to vector<9x2xf32>
    %409 = arith.mulf %56, %408 : vector<9x2xf32>
    %410 = vector.extract_strided_slice %397 {offsets = [1, 0], sizes = [1, 2], strides = [1, 1]} : vector<9x2xf32> to vector<1x2xf32>
    %411 = vector.broadcast %410 : vector<1x2xf32> to vector<9x2xf32>
    %412 = arith.mulf %59, %411 : vector<9x2xf32>
    %413 = vector.extract_strided_slice %397 {offsets = [2, 0], sizes = [1, 2], strides = [1, 1]} : vector<9x2xf32> to vector<1x2xf32>
    %414 = vector.broadcast %413 : vector<1x2xf32> to vector<9x2xf32>
    %415 = arith.mulf %62, %414 : vector<9x2xf32>
    %416 = vector.extract_strided_slice %397 {offsets = [3, 0], sizes = [1, 2], strides = [1, 1]} : vector<9x2xf32> to vector<1x2xf32>
    %417 = vector.broadcast %416 : vector<1x2xf32> to vector<9x2xf32>
    %418 = arith.mulf %65, %417 : vector<9x2xf32>
    %419 = vector.extract_strided_slice %397 {offsets = [4, 0], sizes = [1, 2], strides = [1, 1]} : vector<9x2xf32> to vector<1x2xf32>
    %420 = vector.broadcast %419 : vector<1x2xf32> to vector<9x2xf32>
    %421 = arith.mulf %68, %420 : vector<9x2xf32>
    %422 = vector.extract_strided_slice %397 {offsets = [5, 0], sizes = [1, 2], strides = [1, 1]} : vector<9x2xf32> to vector<1x2xf32>
    %423 = vector.broadcast %422 : vector<1x2xf32> to vector<9x2xf32>
    %424 = arith.mulf %71, %423 : vector<9x2xf32>
    %425 = vector.extract_strided_slice %397 {offsets = [6, 0], sizes = [1, 2], strides = [1, 1]} : vector<9x2xf32> to vector<1x2xf32>
    %426 = vector.broadcast %425 : vector<1x2xf32> to vector<9x2xf32>
    %427 = arith.mulf %74, %426 : vector<9x2xf32>
    %428 = vector.extract_strided_slice %397 {offsets = [7, 0], sizes = [1, 2], strides = [1, 1]} : vector<9x2xf32> to vector<1x2xf32>
    %429 = vector.broadcast %428 : vector<1x2xf32> to vector<9x2xf32>
    %430 = arith.mulf %77, %429 : vector<9x2xf32>
    %431 = vector.extract_strided_slice %397 {offsets = [8, 0], sizes = [1, 2], strides = [1, 1]} : vector<9x2xf32> to vector<1x2xf32>
    %432 = vector.broadcast %431 : vector<1x2xf32> to vector<9x2xf32>
    %433 = arith.mulf %80, %432 : vector<9x2xf32>
    %434 = arith.addf %406, %409 : vector<9x2xf32>
    %435 = arith.addf %412, %415 : vector<9x2xf32>
    %436 = arith.addf %418, %421 : vector<9x2xf32>
    %437 = arith.addf %424, %427 : vector<9x2xf32>
    %438 = arith.addf %430, %433 : vector<9x2xf32>
    %439 = arith.addf %434, %435 : vector<9x2xf32>
    %440 = arith.addf %436, %437 : vector<9x2xf32>
    %441 = arith.addf %439, %440 : vector<9x2xf32>
    %442 = arith.addf %441, %438 : vector<9x2xf32>
    %443 = math.tanh %442 : vector<9x2xf32>
    %cst_68 = arith.constant 1.000000e+01 : f32
    %444 = vector.broadcast %cst_68 : f32 to vector<9x2xf32>
    %445 = arith.mulf %443, %444 : vector<9x2xf32>
    %c0_69 = arith.constant 0 : index
    %446 = arith.index_cast %c7_i32 : i32 to index
    %c0_70 = arith.constant 0 : index
    %c0_71 = arith.constant 0 : index
    %447 = vector.load %arg4[%c0_69, %446, %c0_70, %c0_71] : memref<1x8x9x2xf32, #tpu.memory_space<vmem>>, vector<1x1x9x2xf32>
    %448 = vector.shape_cast %447 : vector<1x1x9x2xf32> to vector<9x2xf32>
    %449 = vector.shape_cast %445 : vector<9x2xf32> to vector<1x1x9x2xf32>
    tpu.vector_store %arg4[%c0_69, %446, %c0_70, %c0_71], %449 {strides = array<i32>} : memref<1x8x9x2xf32, #tpu.memory_space<vmem>>, vector<1x1x9x2xf32>,
    %c8_i32 = arith.constant 8 : i32
    return
  }
  func.func @transform_0(%arg0: i32) -> (i32, i32, i32) {
    %c0_i32 = arith.constant 0 : i32
    %c0_i32_0 = arith.constant 0 : i32
    %c0_i32_1 = arith.constant 0 : i32
    return %arg0, %c0_i32, %c0_i32_0 : i32, i32, i32
  }
  func.func @transform_1(%arg0: i32) -> (i32, i32) {
    %c0_i32 = arith.constant 0 : i32
    %c0_i32_0 = arith.constant 0 : i32
    %c0_i32_1 = arith.constant 0 : i32
    return %c0_i32, %c0_i32_0 : i32, i32
  }
  func.func @transform_2(%arg0: i32) -> (i32, i32) {
    %c0_i32 = arith.constant 0 : i32
    %c0_i32_0 = arith.constant 0 : i32
    %c0_i32_1 = arith.constant 0 : i32
    return %c0_i32, %c0_i32_0 : i32, i32
  }
  func.func @transform_3(%arg0: i32) -> (i32, i32, i32, i32) {
    %c0_i32 = arith.constant 0 : i32
    %c0_i32_0 = arith.constant 0 : i32
    %c0_i32_1 = arith.constant 0 : i32
    %c0_i32_2 = arith.constant 0 : i32
    return %arg0, %c0_i32, %c0_i32_0, %c0_i32_1 : i32, i32, i32, i32
  }
}

</mosaic_0001>

<bundles_post_ra>
// kernel: _lambda_.1
= control target key start
LH: loop header
LB: loop body
LE: loop exit
PB: predicated region body
PF: predicated region fallthrough
CT: control target
= control target key end

     0   :  { %8 = vsyncpa [#allocation4], 0  ;;  %s1392_s0 = inlined_call_operand.hbm [shape: f32[2,8,25], index: 0, kind: input, shape index: {}]   ;;  %s1393_s1 = inlined_call_operand.hbm [shape: f32[25,9], index: 1, kind: input, shape index: {}]   ;;  %s1394_s2 = inlined_call_operand.hbm [shape: f32[9,9], index: 2, kind: input, shape index: {}]   ;;  %s1395_s3 = inlined_call_operand.vmem [shape: f32[1,8,9,2], index: 3, kind: output, shape index: {}]  }
   0x1   :  { %9 = vsyncpa [#allocation6], 0  ;;  %s27_s14 = sshll.u32 %s1393_s1, 4  ;;  %s1081_s15 = smov [#allocation5]   ;;  %s28_s14 = int_to_ptr.hbm [resolvable:$true] %s27_s14 }
   0x2   :  { %s29_s16 = sshll.u32 %s1081_s15, 4  ;;  %s14_s19 = sshll.u32 %s1392_s0, 4  ;;  %s30_s16 = int_to_ptr.vmem [resolvable:$true] %s29_s16  ;;  %s15_s19 = int_to_ptr.hbm [resolvable:$true] %s14_s19 }
   0x3   :  { %s1082_s20 = smov 128   ;;  %s1083_s21 = smov 8  }
   0x4   :  { %35 = dma.hbm_to_vmem [thread:$0]  %s28_s14, 512, %s30_s16, [#allocation6], %s1082_s20, %s1082_s20, %s1083_s21  }
   0x5   :  { %s1084_s22 = smov [#allocation3]   ;;  %s40_s26 = sshll.u32 %s1394_s2, 4  ;;  %s41_s26 = int_to_ptr.hbm [resolvable:$true] %s40_s26 }
   0x6   :  { %s16_s23 = sshll.u32 %s1084_s22, 4  ;;  %s1085_s1 = smov [#allocation7]   ;;  %s17_s23 = int_to_ptr.vmem [resolvable:$true] %s16_s23 }
   0x7   :  { %22 = dma.hbm_to_vmem [thread:$0]  %s15_s19, 256, %s17_s23, [#allocation4], %s1082_s20, %s1082_s20, %s1083_s21  }
   0x8   :  { %s42_s27 = sshll.u32 %s1085_s1, 4  ;;  %s43_s27 = int_to_ptr.vmem [resolvable:$true] %s42_s27 }
   0x9   :  { %48 = dma.hbm_to_vmem [thread:$0]  %s41_s26, 256, %s43_s27, [#allocation6], %s1082_s20, %s1082_s20, %s1083_s21  }
   0xa   :  { %1077 = dma.done.wait [#allocation4], 256  }
   0xb   :  { %1078 = vsyncadd [#allocation4], 4294967040 }
   0xc   :  { %1079 = dma.done.wait [#allocation6], 768  }
   0xd   :  { %1080 = vsyncadd [#allocation6], 4294966528  ;;  %v1086_v0 = vmov 2   ;;  %v1087_v1 = vmov 0   ;;  %v1088_v2 = vmov 4   ;;  %vm74_vm0 = vcmask 1040384  }
   0xe   :  { %957 = vset.pattern.permute.xlu1 %v1086_v0  ;;  %955 = vset.pattern.permute.xlu0 %v1087_v1  ;;  %v66_v3 = vld [vmem:[#allocation5 + $0x18] sm:$0x1]  ;;  %v65_v4 = vld [vmem:[#allocation5 + $0x10] sm:$0xff]  ;;  %v64_v5 = vld [vmem:[#allocation5 + $0x8] sm:$0xff]  ;;  %vm67_vm1 = vcmask 203776   ;;  %v1089_v10 = vmov 3  }
   0xf   :  { %959 = vset.pattern.permute.xlu2 %v1088_v2  ;;  %919 = vmatpush.msk.msra.mxu0 %vm74_vm0, %v66_v3  ;;  %v415_v6 = vld [vmem:[#allocation7] sm:$0xff]  ;;  %v61_v8 = vld [vmem:[#allocation3] sm:$0xff]  ;;  %v62_v9 = vld [vmem:[#allocation3 + $0x8] sm:$0xff]  ;;  %v1090_v11 = vmov 1   ;;  %v1091_v12 = vmov 5   ;;  %v1092_v14 = vmov 6  }
  0x10   :  { %936 = vmatpush.msk.msra.mxu1 %vm74_vm0, %v66_v3  ;;  %v63_v7 = vld [vmem:[#allocation5] sm:$0xff]  ;;  %436 = vperm.xlu1 %957, %v415_v6   ;;  %v416_v13 = vld [vmem:[#allocation7 + $0x8] sm:$0x1]  ;;  %v1093_v15 = vmov 7   ;;  %v1094_v16 = vmov 8   ;;  %vm104_vm2 = vcmask 1041409  }
  0x11   :  { %91 = vmatpush.msra.mxu0 %v65_v4  ;;  %419 = vperm.xlu0 %955, %v415_v6   ;;  %vm139_vm3 = vcmask 15360   ;;  %vm141_vm4 = vcmask 8192  }
  0x12   :  { %937 = vmatpush.msra.mxu1 %v65_v4  ;;  %452 = vperm.xlu2 %959, %v415_v6  }
  0x13   :  { %92 = vmatpush.msra.mxu0 %v64_v5 }
  0x14   :  { %938 = vmatpush.msra.mxu1 %v64_v5 }
  0x15   :  { %93 = vmatpush.msra.mxu0 %v63_v7 }
  0x16   :  { %939 = vmatpush.msra.mxu1 %v63_v7  ;;  %920 = vmatmul.msk.f32.vlgmr.msra.gmra.mxu0 %vm67_vm1, %v61_v8 }
  0x17   :  { %921 = vmatmul.msk.f32.vlgmr.msra.gmra.mxu1 %vm67_vm1, %v62_v9 }
  0x18   :  { %958 = vset.pattern.permute.xlu1 %v1089_v10 }
  0x19   :  { %956 = vset.pattern.permute.xlu0 %v1090_v11  ;;  %444 = vperm.xlu1 %958, %v415_v6  }
  0x1a   :  { %428 = vperm.xlu0 %956, %v415_v6   ;;  %960 = vset.pattern.permute.xlu2 %v1091_v12 }
  0x1b   :  { %460 = vperm.xlu2 %960, %v415_v6  }
  0x21   :  { %961 = vset.pattern.permute.xlu1 %v1092_v14 }
  0x22   :  { %432 = vperm.xlu0 %956, %v416_v13   ;;  %468 = vperm.xlu1 %961, %v415_v6  }
  0x23   :  { %962 = vset.pattern.permute.xlu2 %v1087_v1 }
  0x24   :  { %424 = vperm.xlu2 %962, %v416_v13  }
  0x2a   :  { %965 = vset.pattern.permute.xlu0 %v1088_v2  ;;  %963 = vset.pattern.permute.xlu1 %v1086_v0 }
  0x2b   :  { %456 = vperm.xlu0 %965, %v416_v13   ;;  %440 = vperm.xlu1 %963, %v416_v13  }
  0x2c   :  { %964 = vset.pattern.permute.xlu2 %v1089_v10 }
  0x2d   :  { %448 = vperm.xlu2 %964, %v416_v13  }
  0x33   :  { %970 = vset.pattern.permute.xlu0 %v1093_v15  ;;  %966 = vset.pattern.permute.xlu1 %v1091_v12 }
  0x34   :  { %480 = vperm.xlu0 %970, %v416_v13   ;;  %464 = vperm.xlu1 %966, %v416_v13  }
  0x35   :  { %967 = vset.pattern.permute.xlu2 %v1092_v14 }
  0x36   :  { %472 = vperm.xlu2 %967, %v416_v13  }
  0x3c   :  { %968 = vset.pattern.permute.xlu1 %v1093_v15 }
  0x3d   :  { %476 = vperm.xlu1 %968, %v415_v6  }
  0x3e   :  { %969 = vset.pattern.permute.xlu2 %v1094_v16 }
  0x3f   :  { %484 = vperm.xlu2 %969, %v415_v6  }
  0x45   :  { %971 = vset.pattern.permute.xlu1 %v1094_v16 }
  0x46   :  { %488 = vperm.xlu1 %971, %v416_v13  }
  0x6c   :  { %v1132_v41 = vpop.permute.xlu2 %452 }
  0x6d   :  { %v501_v60 = vmul.f32 0.0, %v1132_v41 }
  0x75   :  { %v1136_v43 = vpop.permute.xlu2 %460 }
  0x76   :  { %v503_v62 = vmul.f32 0.0, %v1136_v43 }
  0x7e   :  { %v1140_v45 = vpop.permute.xlu2 %424 }
  0x82   :  { %v1134_v42 = vpop.permute.xlu1 %436 }
  0x83   :  { %v1142_v46 = vpop.permute.xlu0 %419  ;;  %v497_v0 = vmul.f32 0.0, %v1134_v42 }
  0x84   :  { %v493_v4 = vmul.f32 0.0, %v1142_v46 }
  0x87   :  { %v1146_v48 = vpop.permute.xlu2 %448 }
  0x88   :  { %v500_v11 = vmul.f32 0.0, %v1146_v48 }
  0x8b   :  { %v1138_v44 = vpop.permute.xlu1 %444 }
  0x8c   :  { %v1148_v49 = vpop.permute.xlu0 %428  ;;  %v499_v61 = vmul.f32 0.0, %v1138_v44 }
  0x8d   :  { %v495_v1 = vmul.f32 0.0, %v1148_v49 }
  0x8e   :  { %v515_v2 = vadd.f32 %v501_v60, %v499_v61 }
  0x8f   :  { %v513_v7 = vadd.f32 %v497_v0, %v495_v1 }
  0x90   :  { %v1154_v52 = vpop.permute.xlu2 %472 }
  0x91   :  { %v506_v12 = vmul.f32 0.0, %v1154_v52 }
  0x93   :  { %v95_v17 = vpop.f32.mrf.mxu0 }
  0x94   :  { %v98_v18 = vpop.f32.mrf.mxu1  ;;  %v181_v19 = vrot.slane %v95_v17, 2  ;;  %v143_v21 = vrot.slane %v95_v17, 1  ;;  %v259_v26 = vrot.slane %v95_v17, 4  ;;  %v337_v28 = vrot.slane %v95_v17, 6  ;;  %v1144_v47 = vpop.permute.xlu1 %468 }
  0x95   :  { %v182_v20 = vrot.slane %v98_v18, 1  ;;  %v103_v22 = vrot.slane %v98_v18, 7  ;;  %v260_v27 = vrot.slane %v98_v18, 3  ;;  %v338_v29 = vrot.slane %v98_v18, 5  ;;  %v1152_v51 = vpop.permute.xlu0 %432 }
  0x96   :  { %v144_v24 = vsel %vm104_vm2, %v98_v18, %v143_v21  ;;  %v220_v30 = vrot.slane %v95_v17, 3  ;;  %v221_v31 = vrot.slane %v98_v18, 2  ;;  %v376_v35 = vrot.slane %v95_v17, 7 }
  0x97   :  { %v183_v23 = vsel %vm104_vm2, %v182_v20, %v181_v19  ;;  %v105_v25 = vsel %vm104_vm2, %v103_v22, %v95_v17  ;;  %146 = vxpose.xlu1.b32.start.end [1/1] (short) (narrow) %v144_v24, 16  ;;  %v261_v32 = vsel %vm104_vm2, %v260_v27, %v259_v26  ;;  %v339_v33 = vsel %vm104_vm2, %v338_v29, %v337_v28 }
  0x98   :  { %185 = vxpose.xlu0.b32.start.end [1/1] (short) (narrow) %v183_v23, 16  ;;  %107 = vxpose.xlu2.b32.start.end [1/1] (short) (narrow) %v105_v25, 16  ;;  %v222_v34 = vsel %vm104_vm2, %v221_v31, %v220_v30  ;;  %v377_v36 = vrot.slane %v98_v18, 6  ;;  %v298_v37 = vrot.slane %v95_v17, 5  ;;  %v299_v38 = vrot.slane %v98_v18, 4 }
  0x99   :  { %v1158_v54 = vpop.permute.xlu2 %484  ;;  %v505_v63 = vmul.f32 0.0, %v1144_v47  ;;  %v496_v20 = vmul.f32 0.0, %v1152_v51  ;;  %v494_v23 = vmul.f32 0.0, %v1140_v45 }
  0x9a   :  { %v378_v39 = vsel %vm104_vm2, %v377_v36, %v376_v35  ;;  %v300_v40 = vsel %vm104_vm2, %v299_v38, %v298_v37  ;;  %v509_v8 = vmul.f32 0.0, %v1158_v54 }
  0x9b   :  { %v517_v3 = vadd.f32 %v505_v63, %v503_v62 }
  0x9d   :  { %v1150_v50 = vpop.permute.xlu1 %440  ;;  %v1160_v55 = vpop.permute.xlu0 %456  ;;  %v523_v15 = vadd.f32 %v517_v3, %v515_v2 }
  0x9e   :  { %v502_v17 = vmul.f32 0.0, %v1160_v55  ;;  %v498_v19 = vmul.f32 0.0, %v1150_v50 }
  0xa0   :  { %v516_v25 = vadd.f32 %v502_v17, %v500_v11  ;;  %v514_v27 = vadd.f32 %v498_v19, %v496_v20 }
  0xa6   :  { %v1156_v53 = vpop.permute.xlu1 %464  ;;  %v1167_v59 = vpop.permute.xlu0 %480 }
  0xa7   :  { %341 = vxpose.xlu1.b32.start.end [1/1] (short) (narrow) %v339_v33, 16  ;;  %v508_v30 = vmul.f32 0.0, %v1167_v59 }
  0xa8   :  { %263 = vxpose.xlu0.b32.start.end [1/1] (short) (narrow) %v261_v32, 16  ;;  %224 = vxpose.xlu2.b32.start.end [1/1] (short) (narrow) %v222_v34, 16 }
  0xaf   :  { %v1162_v56 = vpop.permute.xlu1 %476 }
  0xb0   :  { %v507_v9 = vmul.f32 0.0, %v1162_v56 }
  0xb2   :  { %v519_v21 = vadd.f32 %v509_v8, %v507_v9 }
  0xb8   :  { %380 = vxpose.xlu0.b32.start.end [1/1] (short) (narrow) %v378_v39, 16  ;;  %302 = vxpose.xlu2.b32.start.end [1/1] (short) (narrow) %v300_v40, 16  ;;  %v1165_v58 = vpop.permute.xlu1 %488 }
  0xb9   :  { %v510_v29 = vmul.f32 0.0, %v1165_v58 }
  0xbb   :  { %v520_v36 = vadd.f32 %v510_v29, %v508_v30 }
 0x11f   :  { %972 = vset.pattern.permute.xlu0 %v1094_v16  ;;  %v504_v16 = vmul.f32 0.0, %v1156_v53 }
 0x121   :  { %v518_v24 = vadd.f32 %v506_v12, %v504_v16 }
 0x123   :  { %v524_v34 = vadd.f32 %v518_v24, %v516_v25 }
 0x131   :  { %v123_v57 = vpop.trf.xlu2 }
 0x132   :  { %140 = vst.msk [vmem:[#allocation2] sm:$0xff] %vm139_vm3, %v123_v57 }
 0x139   :  { %v491_v5 = vld [vmem:[#allocation2] sm:$0xff]  ;;  %v124_v6 = vpop.trf.xlu2 }
 0x13a   :  { %v511_v10 = vadd.f32 %v493_v4, %v491_v5  ;;  %142 = vst.msk [vmem:[#allocation2 + $0x8] sm:$0x1] %vm141_vm4, %v124_v6 }
 0x13b   :  { %v162_v13 = vpop.trf.xlu1 }
 0x13c   :  { %v201_v14 = vpop.trf.xlu0  ;;  %v521_v18 = vadd.f32 %v513_v7, %v511_v10  ;;  %179 = vst.msk [vmem:[#allocation2 + $0x10] sm:$0xff] %vm139_vm3, %v162_v13 }
 0x13d   :  { %218 = vst.msk [vmem:[#allocation2 + $0x20] sm:$0xff] %vm139_vm3, %v201_v14 }
 0x13e   :  { %v525_v22 = vadd.f32 %v523_v15, %v521_v18 }
 0x140   :  { %v527_v26 = vadd.f32 %v525_v22, %v519_v21 }
 0x141   :  { %v492_v28 = vld [vmem:[#allocation2 + $0x8] sm:$0x1]  ;;  %v240_v9 = vpop.trf.xlu2 }
 0x142   :  { %973 = vtanh.f32 %v527_v26  ;;  %v512_v31 = vadd.f32 %v494_v23, %v492_v28  ;;  %257 = vst.msk [vmem:[#allocation2 + $0x30] sm:$0xff] %vm139_vm3, %v240_v9 }
 0x143   :  { %v163_v32 = vpop.trf.xlu1  ;;  %v535_v62 = vld [vmem:[#allocation2 + $0x10] sm:$0xff] }
 0x144   :  { %v202_v33 = vpop.trf.xlu0  ;;  %v522_v35 = vadd.f32 %v514_v27, %v512_v31  ;;  %180 = vst.msk [vmem:[#allocation2 + $0x18] sm:$0x1] %vm141_vm4, %v163_v32 }
 0x145   :  { %219 = vst.msk [vmem:[#allocation2 + $0x28] sm:$0x1] %vm141_vm4, %v202_v33 }
 0x146   :  { %v526_v37 = vadd.f32 %v524_v34, %v522_v35 }
 0x148   :  { %v974_v38 = vpop.eup %973  ;;  %v528_v39 = vadd.f32 %v526_v37, %v520_v36 }
 0x149   :  { %v531_v40 = vmul.f32 10.0, %v974_v38  ;;  %v537_v57 = vperm.slane %v974_v38, 0  ;;  %v540_v60 = vperm.slane %v974_v38, 1  ;;  %v543_v61 = vperm.slane %v974_v38, 2 }
 0x14a   :  { %975 = vtanh.f32 %v528_v39  ;;  %v546_v63 = vperm.slane %v974_v38, 3  ;;  %v549_v0 = vperm.slane %v974_v38, 4  ;;  %v552_v1 = vperm.slane %v974_v38, 5 }
 0x14b   :  { %533 = vst.msk [vmem:[%s1395_s3] sm:$0xff] %vm139_vm3, %v531_v40  ;;  %v538_v2 = vmul.f32 %v537_v57, %v1142_v46  ;;  %v541_v3 = vmul.f32 %v540_v60, %v1148_v49  ;;  %v544_v4 = vmul.f32 %v543_v61, %v1134_v42  ;;  %v555_v5 = vperm.slane %v974_v38, 6  ;;  %v536_v13 = vld [vmem:[#allocation2 + $0x18] sm:$0x1] }
 0x14c   :  { %v547_v6 = vmul.f32 %v546_v63, %v1138_v44  ;;  %v550_v7 = vmul.f32 %v549_v0, %v1132_v41  ;;  %v553_v8 = vmul.f32 %v552_v1, %v1136_v43  ;;  %v539_v14 = vmul.f32 %v537_v57, %v1140_v45 }
 0x14d   :  { %v556_v10 = vmul.f32 %v555_v5, %v1144_v47  ;;  %v564_v11 = vadd.f32 %v538_v2, %v535_v62  ;;  %v566_v12 = vadd.f32 %v544_v4, %v541_v3  ;;  %v558_v15 = vperm.slane %v974_v38, 7 }
 0x14e   :  { %v568_v16 = vadd.f32 %v550_v7, %v547_v6  ;;  %v542_v17 = vmul.f32 %v540_v60, %v1152_v51  ;;  %v545_v18 = vmul.f32 %v543_v61, %v1150_v50  ;;  %v548_v20 = vmul.f32 %v546_v63, %v1146_v48  ;;  %v241_v61 = vpop.trf.xlu2 }
 0x14f   :  { %v570_v19 = vadd.f32 %v556_v10, %v553_v8  ;;  %v551_v21 = vmul.f32 %v549_v0, %v1160_v55  ;;  %v574_v23 = vadd.f32 %v566_v12, %v564_v11  ;;  %v554_v24 = vmul.f32 %v552_v1, %v1156_v53  ;;  %258 = vst.msk [vmem:[#allocation2 + $0x38] sm:$0x1] %vm141_vm4, %v241_v61  ;;  %v279_v10 = vpop.trf.xlu0 }
 0x150   :  { %v976_v22 = vpop.eup %975  ;;  %v557_v25 = vmul.f32 %v555_v5, %v1154_v52  ;;  %v565_v26 = vadd.f32 %v539_v14, %v536_v13  ;;  %v567_v30 = vadd.f32 %v545_v18, %v542_v17  ;;  %v559_v31 = vmul.f32 %v558_v15, %v1162_v56  ;;  %296 = vst.msk [vmem:[#allocation2 + $0x40] sm:$0xff] %vm139_vm3, %v279_v10 }
 0x151   :  { %v532_v27 = vmul.f32 10.0, %v976_v22  ;;  %v561_v28 = vperm.slane %v976_v22, 0  ;;  %v576_v29 = vadd.f32 %v570_v19, %v568_v16  ;;  %v569_v32 = vadd.f32 %v551_v21, %v548_v20 }
 0x152   :  { %v571_v33 = vadd.f32 %v557_v25, %v554_v24  ;;  %v560_v35 = vmul.f32 %v558_v15, %v1167_v59  ;;  %v575_v37 = vadd.f32 %v567_v30, %v565_v26  ;;  %v589_v15 = vld [vmem:[#allocation2 + $0x20] sm:$0xff] }
 0x153   :  { %534 = vst.msk [vmem:[%s1395_s3 + $0x8] sm:$0x1] %vm141_vm4, %v532_v27  ;;  %v562_v34 = vmul.f32 %v561_v28, %v1158_v54  ;;  %v563_v36 = vmul.f32 %v561_v28, %v1165_v58  ;;  %v578_v40 = vadd.f32 %v576_v29, %v574_v23 }
 0x154   :  { %v577_v38 = vadd.f32 %v571_v33, %v569_v32 }
 0x155   :  { %v572_v39 = vadd.f32 %v562_v34, %v559_v31  ;;  %v573_v57 = vadd.f32 %v563_v36, %v560_v35  ;;  %v590_v31 = vld [vmem:[#allocation2 + $0x28] sm:$0x1] }
 0x156   :  { %v579_v60 = vadd.f32 %v577_v38, %v575_v37 }
 0x157   :  { %v580_v62 = vadd.f32 %v578_v40, %v572_v39 }
 0x158   :  { %v581_v63 = vadd.f32 %v579_v60, %v573_v57 }
 0x159   :  { %977 = vtanh.f32 %v580_v62  ;;  %v280_v62 = vpop.trf.xlu0 }
 0x15a   :  { %979 = vtanh.f32 %v581_v63  ;;  %297 = vst.msk [vmem:[#allocation2 + $0x48] sm:$0x1] %vm141_vm4, %v280_v62 }
 0x15f   :  { %v978_v0 = vpop.eup %977 }
 0x160   :  { %v980_v1 = vpop.eup %979  ;;  %v584_v2 = vmul.f32 10.0, %v978_v0  ;;  %v591_v3 = vperm.slane %v978_v0, 0  ;;  %v594_v4 = vperm.slane %v978_v0, 1  ;;  %v597_v5 = vperm.slane %v978_v0, 2 }
 0x161   :  { %v585_v6 = vmul.f32 10.0, %v980_v1  ;;  %v600_v7 = vperm.slane %v978_v0, 3  ;;  %v603_v8 = vperm.slane %v978_v0, 4  ;;  %v606_v9 = vperm.slane %v978_v0, 5 }
 0x162   :  { %922 = vst.msk [vmem:[%s1395_s3 + $0x10] sm:$0xff] %vm139_vm3, %v584_v2  ;;  %v592_v11 = vmul.f32 %v591_v3, %v1142_v46  ;;  %v595_v12 = vmul.f32 %v594_v4, %v1148_v49  ;;  %v598_v13 = vmul.f32 %v597_v5, %v1134_v42  ;;  %v609_v14 = vperm.slane %v978_v0, 6 }
 0x163   :  { %923 = vst.msk [vmem:[%s1395_s3 + $0x18] sm:$0x1] %vm141_vm4, %v585_v6  ;;  %v601_v16 = vmul.f32 %v600_v7, %v1138_v44  ;;  %v604_v17 = vmul.f32 %v603_v8, %v1132_v41  ;;  %v607_v18 = vmul.f32 %v606_v9, %v1136_v43  ;;  %v612_v19 = vperm.slane %v978_v0, 7 }
 0x164   :  { %v610_v20 = vmul.f32 %v609_v14, %v1144_v47  ;;  %v615_v21 = vperm.slane %v980_v1, 0  ;;  %v618_v22 = vadd.f32 %v592_v11, %v589_v15  ;;  %v620_v23 = vadd.f32 %v598_v13, %v595_v12 }
 0x165   :  { %v613_v24 = vmul.f32 %v612_v19, %v1162_v56  ;;  %v622_v25 = vadd.f32 %v604_v17, %v601_v16  ;;  %v593_v26 = vmul.f32 %v591_v3, %v1140_v45  ;;  %v596_v27 = vmul.f32 %v594_v4, %v1152_v51  ;;  %v318_v16 = vpop.trf.xlu2 }
 0x166   :  { %v616_v28 = vmul.f32 %v615_v21, %v1158_v54  ;;  %v624_v29 = vadd.f32 %v610_v20, %v607_v18  ;;  %v628_v30 = vadd.f32 %v620_v23, %v618_v22  ;;  %v599_v32 = vmul.f32 %v597_v5, %v1150_v50  ;;  %335 = vst.msk [vmem:[#allocation2 + $0x50] sm:$0xff] %vm139_vm3, %v318_v16 }
 0x167   :  { %v602_v33 = vmul.f32 %v600_v7, %v1146_v48  ;;  %v605_v34 = vmul.f32 %v603_v8, %v1160_v55  ;;  %v608_v35 = vmul.f32 %v606_v9, %v1156_v53  ;;  %v611_v36 = vmul.f32 %v609_v14, %v1154_v52 }
 0x168   :  { %v630_v37 = vadd.f32 %v624_v29, %v622_v25  ;;  %v614_v38 = vmul.f32 %v612_v19, %v1167_v59  ;;  %v617_v39 = vmul.f32 %v615_v21, %v1165_v58  ;;  %v619_v40 = vadd.f32 %v593_v26, %v590_v31 }
 0x169   :  { %v621_v57 = vadd.f32 %v599_v32, %v596_v27  ;;  %v623_v60 = vadd.f32 %v605_v34, %v602_v33  ;;  %v625_v61 = vadd.f32 %v611_v36, %v608_v35  ;;  %v626_v63 = vadd.f32 %v616_v28, %v613_v24 }
 0x16a   :  { %v632_v0 = vadd.f32 %v630_v37, %v628_v30  ;;  %v627_v4 = vadd.f32 %v617_v39, %v614_v38  ;;  %v643_v30 = vld [vmem:[#allocation2 + $0x30] sm:$0xff]  ;;  %v644_v39 = vld [vmem:[#allocation2 + $0x38] sm:$0x1] }
 0x16b   :  { %v629_v1 = vadd.f32 %v621_v57, %v619_v40  ;;  %v631_v2 = vadd.f32 %v625_v61, %v623_v60 }
 0x16c   :  { %v634_v3 = vadd.f32 %v632_v0, %v626_v63 }
 0x16d   :  { %v633_v5 = vadd.f32 %v631_v2, %v629_v1 }
 0x16e   :  { %981 = vtanh.f32 %v634_v3 }
 0x16f   :  { %v635_v6 = vadd.f32 %v633_v5, %v627_v4 }
 0x171   :  { %983 = vtanh.f32 %v635_v6 }
 0x174   :  { %v982_v7 = vpop.eup %981 }
 0x175   :  { %v638_v8 = vmul.f32 10.0, %v982_v7  ;;  %v645_v9 = vperm.slane %v982_v7, 0  ;;  %v648_v10 = vperm.slane %v982_v7, 1  ;;  %v651_v11 = vperm.slane %v982_v7, 2 }
 0x176   :  { %v654_v12 = vperm.slane %v982_v7, 3  ;;  %v657_v13 = vperm.slane %v982_v7, 4  ;;  %v660_v14 = vperm.slane %v982_v7, 5  ;;  %v663_v15 = vperm.slane %v982_v7, 6 }
 0x177   :  { %v984_v17 = vpop.eup %983  ;;  %924 = vst.msk [vmem:[%s1395_s3 + $0x20] sm:$0xff] %vm139_vm3, %v638_v8  ;;  %v646_v18 = vmul.f32 %v645_v9, %v1142_v46  ;;  %v649_v19 = vmul.f32 %v648_v10, %v1148_v49  ;;  %v652_v20 = vmul.f32 %v651_v11, %v1134_v42  ;;  %v666_v21 = vperm.slane %v982_v7, 7 }
 0x178   :  { %v639_v22 = vmul.f32 10.0, %v984_v17  ;;  %v655_v23 = vmul.f32 %v654_v12, %v1138_v44  ;;  %v658_v24 = vmul.f32 %v657_v13, %v1132_v41  ;;  %v661_v25 = vmul.f32 %v660_v14, %v1136_v43 }
 0x179   :  { %v664_v26 = vmul.f32 %v663_v15, %v1144_v47  ;;  %v667_v27 = vmul.f32 %v666_v21, %v1162_v56  ;;  %v669_v28 = vperm.slane %v984_v17, 0  ;;  %v674_v29 = vadd.f32 %v652_v20, %v649_v19 }
 0x17a   :  { %925 = vst.msk [vmem:[%s1395_s3 + $0x28] sm:$0x1] %vm141_vm4, %v639_v22  ;;  %v676_v31 = vadd.f32 %v658_v24, %v655_v23  ;;  %v672_v32 = vadd.f32 %v646_v18, %v643_v30  ;;  %v647_v33 = vmul.f32 %v645_v9, %v1140_v45  ;;  %v650_v34 = vmul.f32 %v648_v10, %v1152_v51  ;;  %v319_v9 = vpop.trf.xlu2  ;;  %v357_v23 = vpop.trf.xlu1  ;;  %v697_v30 = vld [vmem:[#allocation2 + $0x40] sm:$0xff] }
 0x17b   :  { %v670_v35 = vmul.f32 %v669_v28, %v1158_v54  ;;  %v678_v36 = vadd.f32 %v664_v26, %v661_v25  ;;  %v653_v37 = vmul.f32 %v651_v11, %v1150_v50  ;;  %v656_v38 = vmul.f32 %v654_v12, %v1146_v48  ;;  %336 = vst.msk [vmem:[#allocation2 + $0x58] sm:$0x1] %vm141_vm4, %v319_v9 }
 0x17c   :  { %v682_v40 = vadd.f32 %v674_v29, %v672_v32  ;;  %v659_v57 = vmul.f32 %v657_v13, %v1160_v55  ;;  %v662_v60 = vmul.f32 %v660_v14, %v1156_v53  ;;  %v665_v61 = vmul.f32 %v663_v15, %v1154_v52  ;;  %374 = vst.msk [vmem:[#allocation2 + $0x60] sm:$0xff] %vm139_vm3, %v357_v23 }
 0x17d   :  { %v684_v62 = vadd.f32 %v678_v36, %v676_v31  ;;  %v668_v63 = vmul.f32 %v666_v21, %v1167_v59  ;;  %v671_v0 = vmul.f32 %v669_v28, %v1165_v58  ;;  %v675_v1 = vadd.f32 %v653_v37, %v650_v34 }
 0x17e   :  { %v677_v2 = vadd.f32 %v659_v57, %v656_v38  ;;  %v679_v3 = vadd.f32 %v665_v61, %v662_v60  ;;  %v673_v4 = vadd.f32 %v647_v33, %v644_v39  ;;  %v680_v5 = vadd.f32 %v670_v35, %v667_v27 }
 0x17f   :  { %v686_v6 = vadd.f32 %v684_v62, %v682_v40  ;;  %v681_v11 = vadd.f32 %v671_v0, %v668_v63  ;;  %v698_v62 = vld [vmem:[#allocation2 + $0x48] sm:$0x1] }
 0x180   :  { %v685_v7 = vadd.f32 %v679_v3, %v677_v2  ;;  %v683_v8 = vadd.f32 %v675_v1, %v673_v4 }
 0x181   :  { %v688_v10 = vadd.f32 %v686_v6, %v680_v5 }
 0x182   :  { %v687_v12 = vadd.f32 %v685_v7, %v683_v8 }
 0x183   :  { %985 = vtanh.f32 %v688_v10 }
 0x184   :  { %v689_v13 = vadd.f32 %v687_v12, %v681_v11  ;;  %v358_v12 = vpop.trf.xlu1 }
 0x185   :  { %375 = vst.msk [vmem:[#allocation2 + $0x68] sm:$0x1] %vm141_vm4, %v358_v12 }
 0x186   :  { %987 = vtanh.f32 %v689_v13 }
 0x189   :  { %v986_v14 = vpop.eup %985 }
 0x18a   :  { %v692_v15 = vmul.f32 10.0, %v986_v14  ;;  %v699_v16 = vperm.slane %v986_v14, 0  ;;  %v702_v17 = vperm.slane %v986_v14, 1  ;;  %v705_v18 = vperm.slane %v986_v14, 2 }
 0x18b   :  { %v708_v19 = vperm.slane %v986_v14, 3  ;;  %v711_v20 = vperm.slane %v986_v14, 4  ;;  %v714_v21 = vperm.slane %v986_v14, 5  ;;  %v717_v22 = vperm.slane %v986_v14, 6 }
 0x18c   :  { %v988_v24 = vpop.eup %987  ;;  %926 = vst.msk [vmem:[%s1395_s3 + $0x30] sm:$0xff] %vm139_vm3, %v692_v15  ;;  %v700_v25 = vmul.f32 %v699_v16, %v1142_v46  ;;  %v703_v26 = vmul.f32 %v702_v17, %v1148_v49  ;;  %v706_v27 = vmul.f32 %v705_v18, %v1134_v42  ;;  %v720_v28 = vperm.slane %v986_v14, 7 }
 0x18d   :  { %v693_v29 = vmul.f32 10.0, %v988_v24  ;;  %v709_v31 = vmul.f32 %v708_v19, %v1138_v44  ;;  %v712_v32 = vmul.f32 %v711_v20, %v1132_v41  ;;  %v715_v33 = vmul.f32 %v714_v21, %v1136_v43 }
 0x18e   :  { %v718_v34 = vmul.f32 %v717_v22, %v1144_v47  ;;  %v721_v35 = vmul.f32 %v720_v28, %v1162_v56  ;;  %v723_v36 = vperm.slane %v988_v24, 0  ;;  %v726_v37 = vadd.f32 %v700_v25, %v697_v30  ;;  %v396_v30 = vpop.trf.xlu0 }
 0x18f   :  { %927 = vst.msk [vmem:[%s1395_s3 + $0x38] sm:$0x1] %vm141_vm4, %v693_v29  ;;  %v728_v38 = vadd.f32 %v706_v27, %v703_v26  ;;  %v730_v39 = vadd.f32 %v712_v32, %v709_v31  ;;  %v701_v40 = vmul.f32 %v699_v16, %v1140_v45  ;;  %v704_v57 = vmul.f32 %v702_v17, %v1152_v51 }
 0x190   :  { %v724_v60 = vmul.f32 %v723_v36, %v1158_v54  ;;  %v732_v61 = vadd.f32 %v718_v34, %v715_v33  ;;  %v707_v63 = vmul.f32 %v705_v18, %v1150_v50  ;;  %v710_v0 = vmul.f32 %v708_v19, %v1146_v48  ;;  %413 = vst.msk [vmem:[#allocation2 + $0x70] sm:$0xff] %vm139_vm3, %v396_v30 }
 0x191   :  { %v736_v1 = vadd.f32 %v728_v38, %v726_v37  ;;  %v713_v2 = vmul.f32 %v711_v20, %v1160_v55  ;;  %v716_v3 = vmul.f32 %v714_v21, %v1156_v53  ;;  %v719_v4 = vmul.f32 %v717_v22, %v1154_v52 }
 0x192   :  { %v738_v5 = vadd.f32 %v732_v61, %v730_v39  ;;  %v722_v6 = vmul.f32 %v720_v28, %v1167_v59  ;;  %v725_v7 = vmul.f32 %v723_v36, %v1165_v58  ;;  %v727_v8 = vadd.f32 %v701_v40, %v698_v62  ;;  %v751_v62 = vld [vmem:[#allocation2 + $0x50] sm:$0xff] }
 0x193   :  { %v729_v9 = vadd.f32 %v707_v63, %v704_v57  ;;  %v731_v10 = vadd.f32 %v713_v2, %v710_v0  ;;  %v733_v11 = vadd.f32 %v719_v4, %v716_v3  ;;  %v734_v13 = vadd.f32 %v724_v60, %v721_v35 }
 0x194   :  { %v740_v14 = vadd.f32 %v738_v5, %v736_v1  ;;  %v735_v18 = vadd.f32 %v725_v7, %v722_v6  ;;  %v752_v7 = vld [vmem:[#allocation2 + $0x58] sm:$0x1] }
 0x195   :  { %v737_v15 = vadd.f32 %v729_v9, %v727_v8  ;;  %v739_v16 = vadd.f32 %v733_v11, %v731_v10 }
 0x196   :  { %v742_v17 = vadd.f32 %v740_v14, %v734_v13 }
 0x197   :  { %v741_v19 = vadd.f32 %v739_v16, %v737_v15 }
 0x198   :  { %989 = vtanh.f32 %v742_v17 }
 0x199   :  { %v743_v20 = vadd.f32 %v741_v19, %v735_v18  ;;  %v397_v19 = vpop.trf.xlu0 }
 0x19a   :  { %414 = vst.msk [vmem:[#allocation2 + $0x78] sm:$0x1] %vm141_vm4, %v397_v19 }
 0x19b   :  { %991 = vtanh.f32 %v743_v20 }
 0x19e   :  { %v990_v21 = vpop.eup %989 }
 0x19f   :  { %v746_v22 = vmul.f32 10.0, %v990_v21  ;;  %v753_v23 = vperm.slane %v990_v21, 0  ;;  %v756_v24 = vperm.slane %v990_v21, 1  ;;  %v759_v25 = vperm.slane %v990_v21, 2 }
 0x1a0   :  { %v762_v26 = vperm.slane %v990_v21, 3  ;;  %v765_v27 = vperm.slane %v990_v21, 4  ;;  %v768_v28 = vperm.slane %v990_v21, 5  ;;  %v771_v29 = vperm.slane %v990_v21, 6 }
 0x1a1   :  { %v992_v31 = vpop.eup %991  ;;  %928 = vst.msk [vmem:[%s1395_s3 + $0x40] sm:$0xff] %vm139_vm3, %v746_v22  ;;  %v754_v32 = vmul.f32 %v753_v23, %v1142_v46  ;;  %v757_v33 = vmul.f32 %v756_v24, %v1148_v49  ;;  %v760_v34 = vmul.f32 %v759_v25, %v1134_v42  ;;  %v774_v35 = vperm.slane %v990_v21, 7 }
 0x1a2   :  { %v747_v36 = vmul.f32 10.0, %v992_v31  ;;  %v763_v37 = vmul.f32 %v762_v26, %v1138_v44  ;;  %v766_v38 = vmul.f32 %v765_v27, %v1132_v41  ;;  %v769_v39 = vmul.f32 %v768_v28, %v1136_v43 }
 0x1a3   :  { %v772_v40 = vmul.f32 %v771_v29, %v1144_v47  ;;  %v775_v57 = vmul.f32 %v774_v35, %v1162_v56  ;;  %v777_v60 = vperm.slane %v992_v31, 0  ;;  %v782_v61 = vadd.f32 %v760_v34, %v757_v33 }
 0x1a4   :  { %929 = vst.msk [vmem:[%s1395_s3 + $0x48] sm:$0x1] %vm141_vm4, %v747_v36  ;;  %v784_v63 = vadd.f32 %v766_v38, %v763_v37  ;;  %v780_v0 = vadd.f32 %v754_v32, %v751_v62  ;;  %v755_v1 = vmul.f32 %v753_v23, %v1140_v45  ;;  %v758_v2 = vmul.f32 %v756_v24, %v1152_v51 }
 0x1a5   :  { %v778_v3 = vmul.f32 %v777_v60, %v1158_v54  ;;  %v786_v4 = vadd.f32 %v772_v40, %v769_v39  ;;  %v761_v5 = vmul.f32 %v759_v25, %v1150_v50  ;;  %v764_v6 = vmul.f32 %v762_v26, %v1146_v48 }
 0x1a6   :  { %v790_v8 = vadd.f32 %v782_v61, %v780_v0  ;;  %v767_v9 = vmul.f32 %v765_v27, %v1160_v55  ;;  %v770_v10 = vmul.f32 %v768_v28, %v1156_v53  ;;  %v773_v11 = vmul.f32 %v771_v29, %v1154_v52  ;;  %v805_v61 = vld [vmem:[#allocation2 + $0x60] sm:$0xff] }
 0x1a7   :  { %v792_v12 = vadd.f32 %v786_v4, %v784_v63  ;;  %v776_v13 = vmul.f32 %v774_v35, %v1167_v59  ;;  %v779_v14 = vmul.f32 %v777_v60, %v1165_v58  ;;  %v783_v15 = vadd.f32 %v761_v5, %v758_v2 }
 0x1a8   :  { %v785_v16 = vadd.f32 %v767_v9, %v764_v6  ;;  %v787_v17 = vadd.f32 %v773_v11, %v770_v10  ;;  %v781_v18 = vadd.f32 %v755_v1, %v752_v7  ;;  %v788_v20 = vadd.f32 %v778_v3, %v775_v57  ;;  %v806_v11 = vld [vmem:[#allocation2 + $0x68] sm:$0x1] }
 0x1a9   :  { %v794_v21 = vadd.f32 %v792_v12, %v790_v8  ;;  %v789_v25 = vadd.f32 %v779_v14, %v776_v13 }
 0x1aa   :  { %v793_v22 = vadd.f32 %v787_v17, %v785_v16  ;;  %v791_v23 = vadd.f32 %v783_v15, %v781_v18 }
 0x1ab   :  { %v796_v24 = vadd.f32 %v794_v21, %v788_v20 }
 0x1ac   :  { %v795_v26 = vadd.f32 %v793_v22, %v791_v23 }
 0x1ad   :  { %993 = vtanh.f32 %v796_v24 }
 0x1ae   :  { %v797_v27 = vadd.f32 %v795_v26, %v789_v25 }
 0x1b0   :  { %995 = vtanh.f32 %v797_v27 }
 0x1b3   :  { %v994_v28 = vpop.eup %993 }
 0x1b4   :  { %v800_v29 = vmul.f32 10.0, %v994_v28  ;;  %v807_v30 = vperm.slane %v994_v28, 0  ;;  %v810_v31 = vperm.slane %v994_v28, 1  ;;  %v813_v32 = vperm.slane %v994_v28, 2 }
 0x1b5   :  { %v816_v33 = vperm.slane %v994_v28, 3  ;;  %v819_v34 = vperm.slane %v994_v28, 4  ;;  %v822_v35 = vperm.slane %v994_v28, 5  ;;  %v825_v36 = vperm.slane %v994_v28, 6 }
 0x1b6   :  { %v996_v37 = vpop.eup %995  ;;  %930 = vst.msk [vmem:[%s1395_s3 + $0x50] sm:$0xff] %vm139_vm3, %v800_v29  ;;  %v808_v38 = vmul.f32 %v807_v30, %v1142_v46  ;;  %v811_v39 = vmul.f32 %v810_v31, %v1148_v49  ;;  %v814_v40 = vmul.f32 %v813_v32, %v1134_v42  ;;  %v828_v57 = vperm.slane %v994_v28, 7 }
 0x1b7   :  { %v801_v60 = vmul.f32 10.0, %v996_v37  ;;  %v817_v62 = vmul.f32 %v816_v33, %v1138_v44  ;;  %v820_v63 = vmul.f32 %v819_v34, %v1132_v41  ;;  %v823_v0 = vmul.f32 %v822_v35, %v1136_v43 }
 0x1b8   :  { %v826_v1 = vmul.f32 %v825_v36, %v1144_v47  ;;  %v829_v2 = vmul.f32 %v828_v57, %v1162_v56  ;;  %v831_v3 = vperm.slane %v996_v37, 0  ;;  %v834_v4 = vadd.f32 %v808_v38, %v805_v61 }
 0x1b9   :  { %931 = vst.msk [vmem:[%s1395_s3 + $0x58] sm:$0x1] %vm141_vm4, %v801_v60  ;;  %v836_v5 = vadd.f32 %v814_v40, %v811_v39  ;;  %v838_v6 = vadd.f32 %v820_v63, %v817_v62  ;;  %v809_v7 = vmul.f32 %v807_v30, %v1140_v45  ;;  %v812_v8 = vmul.f32 %v810_v31, %v1152_v51 }
 0x1ba   :  { %v832_v9 = vmul.f32 %v831_v3, %v1158_v54  ;;  %v840_v10 = vadd.f32 %v826_v1, %v823_v0  ;;  %v815_v12 = vmul.f32 %v813_v32, %v1150_v50  ;;  %v818_v13 = vmul.f32 %v816_v33, %v1146_v48 }
 0x1bb   :  { %v844_v14 = vadd.f32 %v836_v5, %v834_v4  ;;  %v821_v15 = vmul.f32 %v819_v34, %v1160_v55  ;;  %v824_v16 = vmul.f32 %v822_v35, %v1156_v53  ;;  %v827_v17 = vmul.f32 %v825_v36, %v1154_v52 }
 0x1bc   :  { %v846_v18 = vadd.f32 %v840_v10, %v838_v6  ;;  %v830_v19 = vmul.f32 %v828_v57, %v1167_v59  ;;  %v833_v20 = vmul.f32 %v831_v3, %v1165_v58  ;;  %v835_v21 = vadd.f32 %v809_v7, %v806_v11  ;;  %v860_v10 = vld [vmem:[#allocation2 + $0x78] sm:$0x1] }
 0x1bd   :  { %v837_v22 = vadd.f32 %v815_v12, %v812_v8  ;;  %v839_v23 = vadd.f32 %v821_v15, %v818_v13  ;;  %v841_v24 = vadd.f32 %v827_v17, %v824_v16  ;;  %v842_v25 = vadd.f32 %v832_v9, %v829_v2  ;;  %v859_v2 = vld [vmem:[#allocation2 + $0x70] sm:$0xff] }
 0x1be   :  { %v848_v26 = vadd.f32 %v846_v18, %v844_v14  ;;  %v843_v30 = vadd.f32 %v833_v20, %v830_v19 }
 0x1bf   :  { %v845_v27 = vadd.f32 %v837_v22, %v835_v21  ;;  %v847_v28 = vadd.f32 %v841_v24, %v839_v23 }
 0x1c0   :  { %v850_v29 = vadd.f32 %v848_v26, %v842_v25 }
 0x1c1   :  { %v849_v31 = vadd.f32 %v847_v28, %v845_v27 }
 0x1c2   :  { %997 = vtanh.f32 %v850_v29 }
 0x1c3   :  { %v851_v32 = vadd.f32 %v849_v31, %v843_v30 }
 0x1c5   :  { %999 = vtanh.f32 %v851_v32 }
 0x1c8   :  { %v998_v33 = vpop.eup %997 }
 0x1c9   :  { %v854_v34 = vmul.f32 10.0, %v998_v33  ;;  %v861_v35 = vperm.slane %v998_v33, 0  ;;  %v864_v36 = vperm.slane %v998_v33, 1  ;;  %v867_v37 = vperm.slane %v998_v33, 2 }
 0x1ca   :  { %v870_v38 = vperm.slane %v998_v33, 3  ;;  %v873_v39 = vperm.slane %v998_v33, 4  ;;  %v876_v40 = vperm.slane %v998_v33, 5  ;;  %v879_v57 = vperm.slane %v998_v33, 6 }
 0x1cb   :  { %v1000_v60 = vpop.eup %999  ;;  %932 = vst.msk [vmem:[%s1395_s3 + $0x60] sm:$0xff] %vm139_vm3, %v854_v34  ;;  %v862_v61 = vmul.f32 %v861_v35, %v1142_v46  ;;  %v865_v62 = vmul.f32 %v864_v36, %v1148_v49  ;;  %v868_v63 = vmul.f32 %v867_v37, %v1134_v42  ;;  %v882_v0 = vperm.slane %v998_v33, 7 }
 0x1cc   :  { %v855_v1 = vmul.f32 10.0, %v1000_v60  ;;  %v871_v3 = vmul.f32 %v870_v38, %v1138_v44  ;;  %v874_v4 = vmul.f32 %v873_v39, %v1132_v41  ;;  %v877_v5 = vmul.f32 %v876_v40, %v1136_v43 }
 0x1cd   :  { %v880_v6 = vmul.f32 %v879_v57, %v1144_v47  ;;  %v883_v7 = vmul.f32 %v882_v0, %v1162_v56  ;;  %v885_v8 = vperm.slane %v1000_v60, 0  ;;  %v888_v9 = vadd.f32 %v862_v61, %v859_v2 }
 0x1ce   :  { %933 = vst.msk [vmem:[%s1395_s3 + $0x68] sm:$0x1] %vm141_vm4, %v855_v1  ;;  %v890_v42 = vadd.f32 %v868_v63, %v865_v62  ;;  %v892_v46 = vadd.f32 %v874_v4, %v871_v3  ;;  %v863_v49 = vmul.f32 %v861_v35, %v1140_v45  ;;  %v866_v44 = vmul.f32 %v864_v36, %v1152_v51 }
 0x1cf   :  { %v886_v41 = vmul.f32 %v885_v8, %v1158_v54  ;;  %v894_v43 = vadd.f32 %v880_v6, %v877_v5  ;;  %v869_v47 = vmul.f32 %v867_v37, %v1150_v50  ;;  %v872_v56 = vmul.f32 %v870_v38, %v1146_v48 }
 0x1d0   :  { %v898_v11 = vadd.f32 %v890_v42, %v888_v9  ;;  %v875_v12 = vmul.f32 %v873_v39, %v1160_v55  ;;  %v878_v13 = vmul.f32 %v876_v40, %v1156_v53  ;;  %v881_v14 = vmul.f32 %v879_v57, %v1154_v52 }
 0x1d1   :  { %v900_v15 = vadd.f32 %v894_v43, %v892_v46  ;;  %v884_v45 = vmul.f32 %v882_v0, %v1167_v59  ;;  %v887_v51 = vmul.f32 %v885_v8, %v1165_v58  ;;  %v889_v16 = vadd.f32 %v863_v49, %v860_v10 }
 0x1d2   :  { %v891_v54 = vadd.f32 %v869_v47, %v866_v44  ;;  %v893_v17 = vadd.f32 %v875_v12, %v872_v56  ;;  %v895_v18 = vadd.f32 %v881_v14, %v878_v13  ;;  %v896_v19 = vadd.f32 %v886_v41, %v883_v7 }
 0x1d3   :  { %v902_v50 = vadd.f32 %v900_v15, %v898_v11  ;;  %v897_v22 = vadd.f32 %v887_v51, %v884_v45 }
 0x1d4   :  { %v899_v20 = vadd.f32 %v891_v54, %v889_v16  ;;  %v901_v48 = vadd.f32 %v895_v18, %v893_v17 }
 0x1d5   :  { %v904_v21 = vadd.f32 %v902_v50, %v896_v19 }
 0x1d6   :  { %v903_v55 = vadd.f32 %v901_v48, %v899_v20 }
 0x1d7   :  { %1001 = vtanh.f32 %v904_v21 }
 0x1d8   :  { %v905_v53 = vadd.f32 %v903_v55, %v897_v22 }
 0x1da   :  { %1003 = vtanh.f32 %v905_v53 }
 0x1dd   :  { %v1002_v52 = vpop.eup %1001 }
 0x1de   :  { %v908_v23 = vmul.f32 10.0, %v1002_v52 }
 0x1e0   :  { %v1004_v24 = vpop.eup %1003  ;;  %934 = vst.msk [vmem:[%s1395_s3 + $0x70] sm:$0xff] %vm139_vm3, %v908_v23 }
 0x1e1   :  { %v909_v58 = vmul.f32 10.0, %v1004_v24 }
 0x1e3   :  { %935 = vst.msk [vmem:[%s1395_s3 + $0x78] sm:$0x1] %vm141_vm4, %v909_v58 }
 0x1e4   :  { %917 = vsyncpa [#allocation4], 1 }
 0x1e5   :  { %918 = vsyncpa [#allocation6], 1 }

</bundles_post_ra>
